<compile_context>
chip_gen: v5e
topology: v5e:2x2
jax: 0.10.0
libtpu: 0.0.40
codegen_flags: <defaults>
</compile_context>

<pallas_src>
import functools

import jax
import jax.numpy as jnp
from jax.experimental import pallas as pl
from jax.experimental.pallas import tpu as pltpu


def _softplus(x):
    # numerically stable softplus (log1p for accuracy near 0)
    return jnp.maximum(x, 0.0) + jnp.log1p(jnp.exp(-jnp.abs(x)))


def nvae_rollout_kernel(
    # inputs
    dt_ref, I_ref, u_ref, eps_ref, x0_ref, v0_ref,
    Wv1_ref, bv1_ref, WvA_ref, WvB_ref, WvC_ref, bvA_ref, bvB_ref, bvC_ref,
    logstd_p_ref,
    We1_ref, be1_ref, Wem_ref, bem_ref, Wes_ref, bes_ref,
    Wd1_ref, bd1_ref, Wd2_ref, bd2_ref,
    # outputs
    stats_ref, xv_ref,
    # scratch: carried recurrent state + hoisted loop-invariants
    x_c, v_c, stdp_c,
    *, regularization: bool, kl_beta: float,
):
    t = pl.program_id(0)

    # Loop-invariant init: initial state + exp(logstd_p), computed once at t==0.
    @pl.when(t == 0)
    def _init():
        x_c[...] = x0_ref[...]
        v_c[...] = v0_ref[...]
        stdp_c[...] = jnp.exp(logstd_p_ref[...])

    f32 = jnp.float32
    bf16 = jnp.bfloat16

    dt = dt_ref[0, 0]
    x = x_c[...]            # (B, D) carried latent
    v = v_c[...]            # (B, D) carried velocity
    u = u_ref[0]            # (B, D) action at step t
    eps = eps_ref[0]        # (B, D) transition noise at step t
    I = I_ref[0]            # (B, IMG) flattened image at step t

    B = x.shape[0]
    inv_B = 1.0 / B

    # ---------------- f_velocity: v_t = v + dt*(A x + B v + C u) -------------
    # One K=3D MXU matmul instead of three K=D matmuls.
    xvu = jnp.concatenate([x, v, u], axis=-1).astype(bf16)           # (B, 3D)
    h1 = jnp.maximum(
        jnp.dot(xvu, Wv1_ref[...], preferred_element_type=f32) + bv1_ref[...],
        0.0)
    h1b = h1.astype(bf16)
    # Per-head matmuls: each head output starts at lane 0 (no unaligned slices).
    A = -_softplus(jnp.dot(h1b, WvA_ref[...], preferred_element_type=f32) + bvA_ref[...])
    Bm = -_softplus(jnp.dot(h1b, WvB_ref[...], preferred_element_type=f32) + bvB_ref[...])
    C = _softplus(jnp.dot(h1b, WvC_ref[...], preferred_element_type=f32) + bvC_ref[...])
    v_t = v + dt * (A * x + Bm * v + C * u)                          # (B, D)

    # ---------------- p_transition: x_t = mu_p + sigma_p * eps ---------------
    mu_p = x + dt * v_t
    std_p = stdp_c[...]                                              # (1, D)
    x_t = mu_p + std_p * eps                                         # rsample

    # ---------------- p_decoder: unit-variance Gaussian log-likelihood -------
    d1 = jnp.maximum(
        jnp.dot(x_t.astype(bf16), Wd1_ref[...], preferred_element_type=f32) + bd1_ref[...],
        0.0)
    I_rec = jnp.dot(d1.astype(bf16), Wd2_ref[...], preferred_element_type=f32) + bd2_ref[...]
    log2pi = jnp.log(2.0 * jnp.pi)
    logp = -0.5 * ((I - I_rec) ** 2 + log2pi)                        # (B, IMG)
    # img_reduction: sum over flattened (C,H,W), mean over batch  -> (1, 1)
    E_ll = jnp.sum(jnp.sum(logp, axis=1, keepdims=True), axis=0, keepdims=True) * inv_B

    # ---------------- q_encoder ----------------------------------------------
    e1 = jnp.maximum(
        jnp.dot(I.astype(bf16), We1_ref[...], preferred_element_type=f32) + be1_ref[...],
        0.0)
    e1b = e1.astype(bf16)
    mu_q = jnp.dot(e1b, Wem_ref[...], preferred_element_type=f32) + bem_ref[...]
    std_q = _softplus(jnp.dot(e1b, Wes_ref[...], preferred_element_type=f32) + bes_ref[...]) + 1e-6
    log_std_q = jnp.log(std_q)

    # ---------------- KL( q(x|I) || p(x|x_{t-1}, v_t) ) ----------------------
    logstd_p = logstd_p_ref[...]
    var_p = std_p * std_p
    var_q = std_q * std_q
    kl = logstd_p - log_std_q + (var_q + (mu_q - mu_p) ** 2) / (2.0 * var_p) - 0.5
    # vec_reduction: sum over latent dim, mean over batch         -> (1, 1)
    E_kl = jnp.sum(jnp.sum(kl, axis=1, keepdims=True), axis=0, keepdims=True) * inv_B

    E = E_ll - kl_beta * E_kl
    if regularization:
        kl01 = -log_std_q + (var_q + mu_q * mu_q) * 0.5 - 0.5
        E = E - jnp.sum(jnp.sum(kl01, axis=1, keepdims=True), axis=0, keepdims=True) * inv_B

    # ---------------- lane-dense packed outputs ------------------------------
    lane = jax.lax.broadcasted_iota(jnp.int32, (1, 128), 1)
    stats_row = jnp.where(lane == 0, E,
                jnp.where(lane == 1, E_ll,
                jnp.where(lane == 2, E_kl, 0.0)))
    stats_ref[0] = stats_row                                         # (1, 128)
    xv_ref[0] = jnp.concatenate([x_t, v_t], axis=-1)                 # (B, 2D)

    # ---------------- carry recurrent state to next grid step ----------------
    x_c[...] = x_t
    v_c[...] = v_t


def init_params(key, *, dim_x, img_dim, hid_v, hid_enc, hid_dec):
    """Deterministic synthetic parameter init (scaled normals), head-split layout."""
    ks = jax.random.split(key, 9)

    def w(k, shape):
        fan_in = shape[0]
        return (jax.random.normal(k, shape) / jnp.sqrt(jnp.float32(fan_in))).astype(jnp.float32)

    return dict(
        Wv1=w(ks[0], (3 * dim_x, hid_v)), bv1=jnp.zeros((1, hid_v), jnp.float32),
        WvA=w(ks[1], (hid_v, dim_x)), WvB=w(ks[2], (hid_v, dim_x)), WvC=w(ks[3], (hid_v, dim_x)),
        bvA=jnp.zeros((1, dim_x), jnp.float32),
        bvB=jnp.zeros((1, dim_x), jnp.float32),
        bvC=jnp.zeros((1, dim_x), jnp.float32),
        logstd_p=jnp.full((1, dim_x), -1.0, jnp.float32),
        We1=w(ks[4], (img_dim, hid_enc)), be1=jnp.zeros((1, hid_enc), jnp.float32),
        We_mu=w(ks[5], (hid_enc, dim_x)), be_mu=jnp.zeros((1, dim_x), jnp.float32),
        We_std=w(ks[6], (hid_enc, dim_x)), be_std=jnp.zeros((1, dim_x), jnp.float32),
        Wd1=w(ks[7], (dim_x, hid_dec)), bd1=jnp.zeros((1, hid_dec), jnp.float32),
        Wd2=w(ks[8], (hid_dec, img_dim)), bd2=jnp.zeros((1, img_dim), jnp.float32),
    )


def _resident(arr):
    """BlockSpec keeping a full weight array VMEM-resident across all grid steps."""
    zeros = (0,) * arr.ndim
    return pl.BlockSpec(arr.shape, lambda t, _z=zeros: _z)


def newtonian_vae_rollout(I_seq, x0, u_seq, v0, dt, eps_seq, params, *,
                          regularization=False, kl_beta=1.0):
    """Fused T-step rollout of the NewtonianVAECell training-branch forward.

    I_seq: (T, B, C, H, W) NCHW images; x0/v0: (B, D); u_seq/eps_seq: (T, B, D);
    dt: scalar. Returns (E, E_ll, E_kl, x_seq, v_seq), each with leading time axis.
    """
    T, B, Cc, H, W = I_seq.shape
    D = x0.shape[-1]
    IMG = Cc * H * W

    I_flat = I_seq.reshape(T, B, IMG).astype(jnp.float32)
    u_seq = u_seq.astype(jnp.float32)
    eps_seq = eps_seq.astype(jnp.float32)
    x0 = x0.astype(jnp.float32)
    v0 = v0.astype(jnp.float32)
    dt_2d = jnp.asarray(dt, jnp.float32).reshape(1, 1)

    bf = lambda w: w.astype(jnp.bfloat16)   # MXU weights in bf16, f32 accumulation
    weights = [
        bf(params["Wv1"]), params["bv1"],
        bf(params["WvA"]), bf(params["WvB"]), bf(params["WvC"]),
        params["bvA"], params["bvB"], params["bvC"],
        params["logstd_p"],
        bf(params["We1"]), params["be1"],
        bf(params["We_mu"]), params["be_mu"],
        bf(params["We_std"]), params["be_std"],
        bf(params["Wd1"]), params["bd1"],
        bf(params["Wd2"]), params["bd2"],
    ]

    in_specs = [
        pl.BlockSpec((1, 1), lambda t: (0, 0),
                     memory_space=pltpu.MemorySpace.SMEM),           # dt scalar
        pl.BlockSpec((1, B, IMG), lambda t: (t, 0, 0)),              # I_t stream
        pl.BlockSpec((1, B, D), lambda t: (t, 0, 0)),                # u_t stream
        pl.BlockSpec((1, B, D), lambda t: (t, 0, 0)),                # eps_t stream
        pl.BlockSpec((B, D), lambda t: (0, 0)),                      # x0 (used at t==0)
        pl.BlockSpec((B, D), lambda t: (0, 0)),                      # v0 (used at t==0)
    ] + [_resident(w) for w in weights]                              # weights stay resident

    out_specs = (
        pl.BlockSpec((1, 1, 128), lambda t: (t, 0, 0)),              # packed E/E_ll/E_kl
        pl.BlockSpec((1, B, 2 * D), lambda t: (t, 0, 0)),            # packed x_t/v_t
    )
    out_shape = (
        jax.ShapeDtypeStruct((T, 1, 128), jnp.float32),
        jax.ShapeDtypeStruct((T, B, 2 * D), jnp.float32),
    )

    kernel = functools.partial(nvae_rollout_kernel,
                               regularization=regularization, kl_beta=kl_beta)

    stats, xv = pl.pallas_call(
        kernel,
        grid_spec=pltpu.PrefetchScalarGridSpec(
            num_scalar_prefetch=0,
            grid=(T,),
            in_specs=in_specs,
            out_specs=out_specs,
            scratch_shapes=[
                pltpu.VMEM((B, D), jnp.float32),   # x carry
                pltpu.VMEM((B, D), jnp.float32),   # v carry
                pltpu.VMEM((1, D), jnp.float32),   # std_p = exp(logstd_p), hoisted
            ]),
        out_shape=out_shape,
        compiler_params=pltpu.CompilerParams(
            dimension_semantics=("arbitrary",)),   # recurrent carry -> sequential grid
    )(dt_2d, I_flat, u_seq, eps_seq, x0, v0, *weights)

    E = stats[:, 0, 0]
    E_ll = stats[:, 0, 1]
    E_kl = stats[:, 0, 2]
    x_seq = xv[:, :, :D]
    v_seq = xv[:, :, D:]
    return E, E_ll, E_kl, x_seq, v_seq


def newtonian_vae_cell(I_t, x_tn1, u_tn1, v_tn1, dt, eps, params, *, regularization=False):
    """Single-step training-branch forward matching the PyTorch cell's Pack fields."""
    E, E_ll, E_kl, x_seq, v_seq = newtonian_vae_rollout(
        I_t[None], x_tn1, u_tn1[None], v_tn1, dt, eps[None], params,
        regularization=regularization)
    # TODO(synk): the eval (non-training) branch of the PyTorch module is trivial
    # elementwise glue (x_t = q_encoder sample, v_t = (x_t - x_tn1)/dt) and is not
    # implemented here.
    return E[0], E_ll[0], E_kl[0], x_seq[0], v_seq[0]


if __name__ == "__main__":
    # small, module-consistent shapes (hidden widths padded to the 128-lane width)
    T = 8
    B, C, H, W = 2, 4, 16, 16
    DIM_X = 16
    HID_V = HID_ENC = HID_DEC = 128

    key = jax.random.PRNGKey(0)
    k_params, k_I, k_x, k_u, k_v, k_eps = jax.random.split(key, 6)

    params = init_params(
        k_params, dim_x=DIM_X, img_dim=C * H * W,
        hid_v=HID_V, hid_enc=HID_ENC, hid_dec=HID_DEC,
    )

    I_seq = jax.random.uniform(k_I, (T, B, C, H, W), jnp.float32)
    x0 = jax.random.normal(k_x, (B, DIM_X), jnp.float32)
    u_seq = jax.random.normal(k_u, (T, B, DIM_X), jnp.float32)
    v0 = jax.random.normal(k_v, (B, DIM_X), jnp.float32)
    eps_seq = jax.random.normal(k_eps, (T, B, DIM_X), jnp.float32)
    dt = jnp.float32(0.1)

    # fused T-step rollout (one pallas_call, weights VMEM-resident across steps)
    E, E_ll, E_kl, x_seq, v_seq = newtonian_vae_rollout(
        I_seq, x0, u_seq, v0, dt, eps_seq, params, regularization=False)
    jax.block_until_ready((E, E_ll, E_kl, x_seq, v_seq))

    # single-step cell API (T=1 rollout), matching the PyTorch forward signature
    E1, E_ll1, E_kl1, x_t, v_t = newtonian_vae_cell(
        I_seq[0], x0, u_seq[0], v0, dt, eps_seq[0], params, regularization=False)
    jax.block_until_ready((E1, E_ll1, E_kl1, x_t, v_t))

    print("KERNEL_OK")
</pallas_src>

<mosaic_0001>
module attributes {stable_mosaic.version = 11 : i64} {
  func.func @nvae_rollout_kernel(%arg0: i32, %arg1: memref<1x1xf32, #tpu.memory_space<smem>>, %arg2: memref<1x2x1024xf32, #tpu.memory_space<vmem>>, %arg3: memref<1x2x16xf32, #tpu.memory_space<vmem>>, %arg4: memref<1x2x16xf32, #tpu.memory_space<vmem>>, %arg5: memref<2x16xf32, #tpu.memory_space<vmem>>, %arg6: memref<2x16xf32, #tpu.memory_space<vmem>>, %arg7: memref<48x128xbf16, #tpu.memory_space<vmem>>, %arg8: memref<1x128xf32, #tpu.memory_space<vmem>>, %arg9: memref<128x16xbf16, #tpu.memory_space<vmem>>, %arg10: memref<128x16xbf16, #tpu.memory_space<vmem>>, %arg11: memref<128x16xbf16, #tpu.memory_space<vmem>>, %arg12: memref<1x16xf32, #tpu.memory_space<vmem>>, %arg13: memref<1x16xf32, #tpu.memory_space<vmem>>, %arg14: memref<1x16xf32, #tpu.memory_space<vmem>>, %arg15: memref<1x16xf32, #tpu.memory_space<vmem>>, %arg16: memref<1024x128xbf16, #tpu.memory_space<vmem>>, %arg17: memref<1x128xf32, #tpu.memory_space<vmem>>, %arg18: memref<128x16xbf16, #tpu.memory_space<vmem>>, %arg19: memref<1x16xf32, #tpu.memory_space<vmem>>, %arg20: memref<128x16xbf16, #tpu.memory_space<vmem>>, %arg21: memref<1x16xf32, #tpu.memory_space<vmem>>, %arg22: memref<16x128xbf16, #tpu.memory_space<vmem>>, %arg23: memref<1x128xf32, #tpu.memory_space<vmem>>, %arg24: memref<128x1024xbf16, #tpu.memory_space<vmem>>, %arg25: memref<1x1024xf32, #tpu.memory_space<vmem>>, %arg26: memref<1x1x128xf32, #tpu.memory_space<vmem>>, %arg27: memref<1x2x32xf32, #tpu.memory_space<vmem>>, %arg28: memref<2x16xf32, #tpu.memory_space<vmem>>, %arg29: memref<2x16xf32, #tpu.memory_space<vmem>>, %arg30: memref<1x16xf32, #tpu.memory_space<vmem>>) attributes {dimension_semantics = [#tpu.dimension_semantics<arbitrary>], iteration_bounds = array<i64: 8>, scalar_prefetch = 0 : i64, scratch_operands = 3 : i64, tpu.core_type = #tpu.core_type<tc>, window_params = [{transform_indices = @transform_0, window_bounds = array<i64: 1, 1>}, {transform_indices = @transform_1, window_bounds = array<i64: 1, 2, 1024>}, {transform_indices = @transform_2, window_bounds = array<i64: 1, 2, 16>}, {transform_indices = @transform_3, window_bounds = array<i64: 1, 2, 16>}, {pipeline_mode = #tpu.pipeline_mode<synchronous>, transform_indices = @transform_4, window_bounds = array<i64: 2, 16>}, {pipeline_mode = #tpu.pipeline_mode<synchronous>, transform_indices = @transform_5, window_bounds = array<i64: 2, 16>}, {pipeline_mode = #tpu.pipeline_mode<synchronous>, transform_indices = @transform_6, window_bounds = array<i64: 48, 128>}, {pipeline_mode = #tpu.pipeline_mode<synchronous>, transform_indices = @transform_7, window_bounds = array<i64: 1, 128>}, {pipeline_mode = #tpu.pipeline_mode<synchronous>, transform_indices = @transform_8, window_bounds = array<i64: 128, 16>}, {pipeline_mode = #tpu.pipeline_mode<synchronous>, transform_indices = @transform_9, window_bounds = array<i64: 128, 16>}, {pipeline_mode = #tpu.pipeline_mode<synchronous>, transform_indices = @transform_10, window_bounds = array<i64: 128, 16>}, {pipeline_mode = #tpu.pipeline_mode<synchronous>, transform_indices = @transform_11, window_bounds = array<i64: 1, 16>}, {pipeline_mode = #tpu.pipeline_mode<synchronous>, transform_indices = @transform_12, window_bounds = array<i64: 1, 16>}, {pipeline_mode = #tpu.pipeline_mode<synchronous>, transform_indices = @transform_13, window_bounds = array<i64: 1, 16>}, {pipeline_mode = #tpu.pipeline_mode<synchronous>, transform_indices = @transform_14, window_bounds = array<i64: 1, 16>}, {pipeline_mode = #tpu.pipeline_mode<synchronous>, transform_indices = @transform_15, window_bounds = array<i64: 1024, 128>}, {pipeline_mode = #tpu.pipeline_mode<synchronous>, transform_indices = @transform_16, window_bounds = array<i64: 1, 128>}, {pipeline_mode = #tpu.pipeline_mode<synchronous>, transform_indices = @transform_17, window_bounds = array<i64: 128, 16>}, {pipeline_mode = #tpu.pipeline_mode<synchronous>, transform_indices = @transform_18, window_bounds = array<i64: 1, 16>}, {pipeline_mode = #tpu.pipeline_mode<synchronous>, transform_indices = @transform_19, window_bounds = array<i64: 128, 16>}, {pipeline_mode = #tpu.pipeline_mode<synchronous>, transform_indices = @transform_20, window_bounds = array<i64: 1, 16>}, {pipeline_mode = #tpu.pipeline_mode<synchronous>, transform_indices = @transform_21, window_bounds = array<i64: 16, 128>}, {pipeline_mode = #tpu.pipeline_mode<synchronous>, transform_indices = @transform_22, window_bounds = array<i64: 1, 128>}, {pipeline_mode = #tpu.pipeline_mode<synchronous>, transform_indices = @transform_23, window_bounds = array<i64: 128, 1024>}, {pipeline_mode = #tpu.pipeline_mode<synchronous>, transform_indices = @transform_24, window_bounds = array<i64: 1, 1024>}, {transform_indices = @transform_25, window_bounds = array<i64: 1, 1, 128>}, {transform_indices = @transform_26, window_bounds = array<i64: 1, 2, 32>}]} {
    %c0_i32 = arith.constant 0 : i32
    %0 = arith.cmpi eq, %arg0, %c0_i32 : i32
    %1 = arith.extui %0 : i1 to i32
    %c0_i32_0 = arith.constant 0 : i32
    %2 = arith.cmpi ne, %1, %c0_i32_0 : i32
    scf.if %2 {
      %c0_100 = arith.constant 0 : index
      %c0_101 = arith.constant 0 : index
      %187 = vector.load %arg5[%c0_100, %c0_101] : memref<2x16xf32, #tpu.memory_space<vmem>>, vector<2x16xf32>
      %c0_102 = arith.constant 0 : index
      %c0_103 = arith.constant 0 : index
      %188 = vector.load %arg28[%c0_102, %c0_103] : memref<2x16xf32, #tpu.memory_space<vmem>>, vector<2x16xf32>
      tpu.vector_store %arg28[%c0_102, %c0_103], %187 {strides = array<i32>} : memref<2x16xf32, #tpu.memory_space<vmem>>, vector<2x16xf32>,
      %c0_104 = arith.constant 0 : index
      %c0_105 = arith.constant 0 : index
      %189 = vector.load %arg6[%c0_104, %c0_105] : memref<2x16xf32, #tpu.memory_space<vmem>>, vector<2x16xf32>
      %c0_106 = arith.constant 0 : index
      %c0_107 = arith.constant 0 : index
      %190 = vector.load %arg29[%c0_106, %c0_107] : memref<2x16xf32, #tpu.memory_space<vmem>>, vector<2x16xf32>
      tpu.vector_store %arg29[%c0_106, %c0_107], %189 {strides = array<i32>} : memref<2x16xf32, #tpu.memory_space<vmem>>, vector<2x16xf32>,
      %c0_108 = arith.constant 0 : index
      %c0_109 = arith.constant 0 : index
      %191 = vector.load %arg15[%c0_108, %c0_109] : memref<1x16xf32, #tpu.memory_space<vmem>>, vector<1x16xf32>
      %192 = math.exp %191 : vector<1x16xf32>
      %c0_110 = arith.constant 0 : index
      %c0_111 = arith.constant 0 : index
      %193 = vector.load %arg30[%c0_110, %c0_111] : memref<1x16xf32, #tpu.memory_space<vmem>>, vector<1x16xf32>
      tpu.vector_store %arg30[%c0_110, %c0_111], %192 {strides = array<i32>} : memref<1x16xf32, #tpu.memory_space<vmem>>, vector<1x16xf32>,
    } else {
    }
    %c0 = arith.constant 0 : index
    %c0_1 = arith.constant 0 : index
    %3 = memref.load %arg1[%c0, %c0_1] : memref<1x1xf32, #tpu.memory_space<smem>>
    %c0_2 = arith.constant 0 : index
    %c0_3 = arith.constant 0 : index
    %4 = vector.load %arg28[%c0_2, %c0_3] : memref<2x16xf32, #tpu.memory_space<vmem>>, vector<2x16xf32>
    %c0_4 = arith.constant 0 : index
    %c0_5 = arith.constant 0 : index
    %5 = vector.load %arg29[%c0_4, %c0_5] : memref<2x16xf32, #tpu.memory_space<vmem>>, vector<2x16xf32>
    %c0_6 = arith.constant 0 : index
    %c0_7 = arith.constant 0 : index
    %c0_8 = arith.constant 0 : index
    %6 = vector.load %arg3[%c0_6, %c0_7, %c0_8] : memref<1x2x16xf32, #tpu.memory_space<vmem>>, vector<1x2x16xf32>
    %7 = vector.shape_cast %6 : vector<1x2x16xf32> to vector<2x16xf32>
    %c0_9 = arith.constant 0 : index
    %c0_10 = arith.constant 0 : index
    %c0_11 = arith.constant 0 : index
    %8 = vector.load %arg4[%c0_9, %c0_10, %c0_11] : memref<1x2x16xf32, #tpu.memory_space<vmem>>, vector<1x2x16xf32>
    %9 = vector.shape_cast %8 : vector<1x2x16xf32> to vector<2x16xf32>
    %c0_12 = arith.constant 0 : index
    %c0_13 = arith.constant 0 : index
    %c0_14 = arith.constant 0 : index
    %10 = vector.load %arg2[%c0_12, %c0_13, %c0_14] : memref<1x2x1024xf32, #tpu.memory_space<vmem>>, vector<1x2x1024xf32>
    %11 = vector.shape_cast %10 : vector<1x2x1024xf32> to vector<2x1024xf32>
    %12 = tpu.concatenate %4, %5, %7 in 1 : vector<2x16xf32>, vector<2x16xf32>, vector<2x16xf32> -> vector<2x48xf32>
    %13 = arith.truncf %12 : vector<2x48xf32> to vector<2x48xbf16>
    %c0_15 = arith.constant 0 : index
    %c0_16 = arith.constant 0 : index
    %14 = vector.load %arg7[%c0_15, %c0_16] : memref<48x128xbf16, #tpu.memory_space<vmem>>, vector<48x128xbf16>
    %cst = arith.constant dense<0.000000e+00> : vector<2x128xf32>
    %15 = tpu.matmul %13, %14, %cst {dimension_numbers = #tpu.dot_dimension_numbers<[1], [0], [0], [1], [0, 0, 1, 1], [], []>} : vector<2x48xbf16>, vector<48x128xbf16>, vector<2x128xf32> -> vector<2x128xf32>
    %c0_17 = arith.constant 0 : index
    %c0_18 = arith.constant 0 : index
    %16 = vector.load %arg8[%c0_17, %c0_18] : memref<1x128xf32, #tpu.memory_space<vmem>>, vector<1x128xf32>
    %17 = vector.broadcast %16 : vector<1x128xf32> to vector<2x128xf32>
    %18 = arith.addf %15, %17 : vector<2x128xf32>
    %cst_19 = arith.constant 0.000000e+00 : f32
    %19 = vector.broadcast %cst_19 : f32 to vector<2x128xf32>
    %20 = arith.maximumf %18, %19 : vector<2x128xf32>
    %21 = arith.truncf %20 : vector<2x128xf32> to vector<2x128xbf16>
    %c0_20 = arith.constant 0 : index
    %c0_21 = arith.constant 0 : index
    %22 = vector.load %arg9[%c0_20, %c0_21] : memref<128x16xbf16, #tpu.memory_space<vmem>>, vector<128x16xbf16>
    %cst_22 = arith.constant dense<0.000000e+00> : vector<2x16xf32>
    %23 = tpu.matmul %21, %22, %cst_22 {dimension_numbers = #tpu.dot_dimension_numbers<[1], [0], [0], [1], [0, 0, 1, 1], [], []>} : vector<2x128xbf16>, vector<128x16xbf16>, vector<2x16xf32> -> vector<2x16xf32>
    %c0_23 = arith.constant 0 : index
    %c0_24 = arith.constant 0 : index
    %24 = vector.load %arg12[%c0_23, %c0_24] : memref<1x16xf32, #tpu.memory_space<vmem>>, vector<1x16xf32>
    %25 = vector.broadcast %24 : vector<1x16xf32> to vector<2x16xf32>
    %26 = arith.addf %23, %25 : vector<2x16xf32>
    %cst_25 = arith.constant 0.000000e+00 : f32
    %27 = vector.broadcast %cst_25 : f32 to vector<2x16xf32>
    %28 = arith.maximumf %26, %27 : vector<2x16xf32>
    %29 = math.absf %26 : vector<2x16xf32>
    %cst_26 = arith.constant 0.000000e+00 : f32
    %30 = vector.broadcast %cst_26 : f32 to vector<2x16xf32>
    %31 = arith.subf %30, %29 : vector<2x16xf32>
    %32 = math.exp %31 : vector<2x16xf32>
    %33 = math.log1p %32 : vector<2x16xf32>
    %34 = arith.addf %28, %33 : vector<2x16xf32>
    %cst_27 = arith.constant 0.000000e+00 : f32
    %35 = vector.broadcast %cst_27 : f32 to vector<2x16xf32>
    %36 = arith.subf %35, %34 : vector<2x16xf32>
    %c0_28 = arith.constant 0 : index
    %c0_29 = arith.constant 0 : index
    %37 = vector.load %arg10[%c0_28, %c0_29] : memref<128x16xbf16, #tpu.memory_space<vmem>>, vector<128x16xbf16>
    %cst_30 = arith.constant dense<0.000000e+00> : vector<2x16xf32>
    %38 = tpu.matmul %21, %37, %cst_30 {dimension_numbers = #tpu.dot_dimension_numbers<[1], [0], [0], [1], [0, 0, 1, 1], [], []>} : vector<2x128xbf16>, vector<128x16xbf16>, vector<2x16xf32> -> vector<2x16xf32>
    %c0_31 = arith.constant 0 : index
    %c0_32 = arith.constant 0 : index
    %39 = vector.load %arg13[%c0_31, %c0_32] : memref<1x16xf32, #tpu.memory_space<vmem>>, vector<1x16xf32>
    %40 = vector.broadcast %39 : vector<1x16xf32> to vector<2x16xf32>
    %41 = arith.addf %38, %40 : vector<2x16xf32>
    %cst_33 = arith.constant 0.000000e+00 : f32
    %42 = vector.broadcast %cst_33 : f32 to vector<2x16xf32>
    %43 = arith.maximumf %41, %42 : vector<2x16xf32>
    %44 = math.absf %41 : vector<2x16xf32>
    %cst_34 = arith.constant 0.000000e+00 : f32
    %45 = vector.broadcast %cst_34 : f32 to vector<2x16xf32>
    %46 = arith.subf %45, %44 : vector<2x16xf32>
    %47 = math.exp %46 : vector<2x16xf32>
    %48 = math.log1p %47 : vector<2x16xf32>
    %49 = arith.addf %43, %48 : vector<2x16xf32>
    %cst_35 = arith.constant 0.000000e+00 : f32
    %50 = vector.broadcast %cst_35 : f32 to vector<2x16xf32>
    %51 = arith.subf %50, %49 : vector<2x16xf32>
    %c0_36 = arith.constant 0 : index
    %c0_37 = arith.constant 0 : index
    %52 = vector.load %arg11[%c0_36, %c0_37] : memref<128x16xbf16, #tpu.memory_space<vmem>>, vector<128x16xbf16>
    %cst_38 = arith.constant dense<0.000000e+00> : vector<2x16xf32>
    %53 = tpu.matmul %21, %52, %cst_38 {dimension_numbers = #tpu.dot_dimension_numbers<[1], [0], [0], [1], [0, 0, 1, 1], [], []>} : vector<2x128xbf16>, vector<128x16xbf16>, vector<2x16xf32> -> vector<2x16xf32>
    %c0_39 = arith.constant 0 : index
    %c0_40 = arith.constant 0 : index
    %54 = vector.load %arg14[%c0_39, %c0_40] : memref<1x16xf32, #tpu.memory_space<vmem>>, vector<1x16xf32>
    %55 = vector.broadcast %54 : vector<1x16xf32> to vector<2x16xf32>
    %56 = arith.addf %53, %55 : vector<2x16xf32>
    %cst_41 = arith.constant 0.000000e+00 : f32
    %57 = vector.broadcast %cst_41 : f32 to vector<2x16xf32>
    %58 = arith.maximumf %56, %57 : vector<2x16xf32>
    %59 = math.absf %56 : vector<2x16xf32>
    %cst_42 = arith.constant 0.000000e+00 : f32
    %60 = vector.broadcast %cst_42 : f32 to vector<2x16xf32>
    %61 = arith.subf %60, %59 : vector<2x16xf32>
    %62 = math.exp %61 : vector<2x16xf32>
    %63 = math.log1p %62 : vector<2x16xf32>
    %64 = arith.addf %58, %63 : vector<2x16xf32>
    %65 = arith.mulf %36, %4 : vector<2x16xf32>
    %66 = arith.mulf %51, %5 : vector<2x16xf32>
    %67 = arith.addf %65, %66 : vector<2x16xf32>
    %68 = arith.mulf %64, %7 : vector<2x16xf32>
    %69 = arith.addf %67, %68 : vector<2x16xf32>
    %70 = vector.broadcast %3 : f32 to vector<2x16xf32>
    %71 = arith.mulf %70, %69 : vector<2x16xf32>
    %72 = arith.addf %5, %71 : vector<2x16xf32>
    %73 = vector.broadcast %3 : f32 to vector<2x16xf32>
    %74 = arith.mulf %73, %72 : vector<2x16xf32>
    %75 = arith.addf %4, %74 : vector<2x16xf32>
    %c0_43 = arith.constant 0 : index
    %c0_44 = arith.constant 0 : index
    %76 = vector.load %arg30[%c0_43, %c0_44] : memref<1x16xf32, #tpu.memory_space<vmem>>, vector<1x16xf32>
    %77 = vector.broadcast %76 : vector<1x16xf32> to vector<2x16xf32>
    %78 = arith.mulf %77, %9 : vector<2x16xf32>
    %79 = arith.addf %75, %78 : vector<2x16xf32>
    %80 = arith.truncf %79 : vector<2x16xf32> to vector<2x16xbf16>
    %c0_45 = arith.constant 0 : index
    %c0_46 = arith.constant 0 : index
    %81 = vector.load %arg22[%c0_45, %c0_46] : memref<16x128xbf16, #tpu.memory_space<vmem>>, vector<16x128xbf16>
    %cst_47 = arith.constant dense<0.000000e+00> : vector<2x128xf32>
    %82 = tpu.matmul %80, %81, %cst_47 {dimension_numbers = #tpu.dot_dimension_numbers<[1], [0], [0], [1], [0, 0, 1, 1], [], []>} : vector<2x16xbf16>, vector<16x128xbf16>, vector<2x128xf32> -> vector<2x128xf32>
    %c0_48 = arith.constant 0 : index
    %c0_49 = arith.constant 0 : index
    %83 = vector.load %arg23[%c0_48, %c0_49] : memref<1x128xf32, #tpu.memory_space<vmem>>, vector<1x128xf32>
    %84 = vector.broadcast %83 : vector<1x128xf32> to vector<2x128xf32>
    %85 = arith.addf %82, %84 : vector<2x128xf32>
    %cst_50 = arith.constant 0.000000e+00 : f32
    %86 = vector.broadcast %cst_50 : f32 to vector<2x128xf32>
    %87 = arith.maximumf %85, %86 : vector<2x128xf32>
    %88 = arith.truncf %87 : vector<2x128xf32> to vector<2x128xbf16>
    %c0_51 = arith.constant 0 : index
    %c0_52 = arith.constant 0 : index
    %89 = vector.load %arg24[%c0_51, %c0_52] : memref<128x1024xbf16, #tpu.memory_space<vmem>>, vector<128x1024xbf16>
    %cst_53 = arith.constant dense<0.000000e+00> : vector<2x1024xf32>
    %90 = tpu.matmul %88, %89, %cst_53 {dimension_numbers = #tpu.dot_dimension_numbers<[1], [0], [0], [1], [0, 0, 1, 1], [], []>} : vector<2x128xbf16>, vector<128x1024xbf16>, vector<2x1024xf32> -> vector<2x1024xf32>
    %c0_54 = arith.constant 0 : index
    %c0_55 = arith.constant 0 : index
    %91 = vector.load %arg25[%c0_54, %c0_55] : memref<1x1024xf32, #tpu.memory_space<vmem>>, vector<1x1024xf32>
    %92 = vector.broadcast %91 : vector<1x1024xf32> to vector<2x1024xf32>
    %93 = arith.addf %90, %92 : vector<2x1024xf32>
    %cst_56 = arith.constant 6.28318548 : f32
    %94 = math.log %cst_56 : f32
    %95 = arith.subf %11, %93 : vector<2x1024xf32>
    %96 = arith.mulf %95, %95 : vector<2x1024xf32>
    %97 = vector.broadcast %94 : f32 to vector<2x1024xf32>
    %98 = arith.addf %96, %97 : vector<2x1024xf32>
    %cst_57 = arith.constant -5.000000e-01 : f32
    %99 = vector.broadcast %cst_57 : f32 to vector<2x1024xf32>
    %100 = arith.mulf %99, %98 : vector<2x1024xf32>
    %cst_58 = arith.constant dense<0.000000e+00> : vector<2xf32>
    %101 = vector.multi_reduction <add>, %100, %cst_58 [1] : vector<2x1024xf32> to vector<2xf32>
    %102 = vector.shape_cast %101 : vector<2xf32> to vector<2x1xf32>
    %cst_59 = arith.constant dense<0.000000e+00> : vector<1xf32>
    %103 = vector.multi_reduction <add>, %102, %cst_59 [0] : vector<2x1xf32> to vector<1xf32>
    %104 = vector.shape_cast %103 : vector<1xf32> to vector<1x1xf32>
    %cst_60 = arith.constant 5.000000e-01 : f32
    %105 = vector.broadcast %cst_60 : f32 to vector<1x1xf32>
    %106 = arith.mulf %104, %105 : vector<1x1xf32>
    %107 = arith.truncf %11 : vector<2x1024xf32> to vector<2x1024xbf16>
    %c0_61 = arith.constant 0 : index
    %c0_62 = arith.constant 0 : index
    %108 = vector.load %arg16[%c0_61, %c0_62] : memref<1024x128xbf16, #tpu.memory_space<vmem>>, vector<1024x128xbf16>
    %cst_63 = arith.constant dense<0.000000e+00> : vector<2x128xf32>
    %109 = tpu.matmul %107, %108, %cst_63 {dimension_numbers = #tpu.dot_dimension_numbers<[1], [0], [0], [1], [0, 0, 1, 1], [], []>} : vector<2x1024xbf16>, vector<1024x128xbf16>, vector<2x128xf32> -> vector<2x128xf32>
    %c0_64 = arith.constant 0 : index
    %c0_65 = arith.constant 0 : index
    %110 = vector.load %arg17[%c0_64, %c0_65] : memref<1x128xf32, #tpu.memory_space<vmem>>, vector<1x128xf32>
    %111 = vector.broadcast %110 : vector<1x128xf32> to vector<2x128xf32>
    %112 = arith.addf %109, %111 : vector<2x128xf32>
    %cst_66 = arith.constant 0.000000e+00 : f32
    %113 = vector.broadcast %cst_66 : f32 to vector<2x128xf32>
    %114 = arith.maximumf %112, %113 : vector<2x128xf32>
    %115 = arith.truncf %114 : vector<2x128xf32> to vector<2x128xbf16>
    %c0_67 = arith.constant 0 : index
    %c0_68 = arith.constant 0 : index
    %116 = vector.load %arg18[%c0_67, %c0_68] : memref<128x16xbf16, #tpu.memory_space<vmem>>, vector<128x16xbf16>
    %cst_69 = arith.constant dense<0.000000e+00> : vector<2x16xf32>
    %117 = tpu.matmul %115, %116, %cst_69 {dimension_numbers = #tpu.dot_dimension_numbers<[1], [0], [0], [1], [0, 0, 1, 1], [], []>} : vector<2x128xbf16>, vector<128x16xbf16>, vector<2x16xf32> -> vector<2x16xf32>
    %c0_70 = arith.constant 0 : index
    %c0_71 = arith.constant 0 : index
    %118 = vector.load %arg19[%c0_70, %c0_71] : memref<1x16xf32, #tpu.memory_space<vmem>>, vector<1x16xf32>
    %119 = vector.broadcast %118 : vector<1x16xf32> to vector<2x16xf32>
    %120 = arith.addf %117, %119 : vector<2x16xf32>
    %c0_72 = arith.constant 0 : index
    %c0_73 = arith.constant 0 : index
    %121 = vector.load %arg20[%c0_72, %c0_73] : memref<128x16xbf16, #tpu.memory_space<vmem>>, vector<128x16xbf16>
    %cst_74 = arith.constant dense<0.000000e+00> : vector<2x16xf32>
    %122 = tpu.matmul %115, %121, %cst_74 {dimension_numbers = #tpu.dot_dimension_numbers<[1], [0], [0], [1], [0, 0, 1, 1], [], []>} : vector<2x128xbf16>, vector<128x16xbf16>, vector<2x16xf32> -> vector<2x16xf32>
    %c0_75 = arith.constant 0 : index
    %c0_76 = arith.constant 0 : index
    %123 = vector.load %arg21[%c0_75, %c0_76] : memref<1x16xf32, #tpu.memory_space<vmem>>, vector<1x16xf32>
    %124 = vector.broadcast %123 : vector<1x16xf32> to vector<2x16xf32>
    %125 = arith.addf %122, %124 : vector<2x16xf32>
    %cst_77 = arith.constant 0.000000e+00 : f32
    %126 = vector.broadcast %cst_77 : f32 to vector<2x16xf32>
    %127 = arith.maximumf %125, %126 : vector<2x16xf32>
    %128 = math.absf %125 : vector<2x16xf32>
    %cst_78 = arith.constant 0.000000e+00 : f32
    %129 = vector.broadcast %cst_78 : f32 to vector<2x16xf32>
    %130 = arith.subf %129, %128 : vector<2x16xf32>
    %131 = math.exp %130 : vector<2x16xf32>
    %132 = math.log1p %131 : vector<2x16xf32>
    %133 = arith.addf %127, %132 : vector<2x16xf32>
    %cst_79 = arith.constant 9.99999997E-7 : f32
    %134 = vector.broadcast %cst_79 : f32 to vector<2x16xf32>
    %135 = arith.addf %133, %134 : vector<2x16xf32>
    %136 = math.log %135 : vector<2x16xf32>
    %c0_80 = arith.constant 0 : index
    %c0_81 = arith.constant 0 : index
    %137 = vector.load %arg15[%c0_80, %c0_81] : memref<1x16xf32, #tpu.memory_space<vmem>>, vector<1x16xf32>
    %138 = arith.mulf %76, %76 : vector<1x16xf32>
    %139 = arith.mulf %135, %135 : vector<2x16xf32>
    %140 = vector.broadcast %137 : vector<1x16xf32> to vector<2x16xf32>
    %141 = arith.subf %140, %136 : vector<2x16xf32>
    %142 = arith.subf %120, %75 : vector<2x16xf32>
    %143 = arith.mulf %142, %142 : vector<2x16xf32>
    %144 = arith.addf %139, %143 : vector<2x16xf32>
    %cst_82 = arith.constant 2.000000e+00 : f32
    %145 = vector.broadcast %cst_82 : f32 to vector<1x16xf32>
    %146 = arith.mulf %145, %138 : vector<1x16xf32>
    %147 = vector.broadcast %146 : vector<1x16xf32> to vector<2x16xf32>
    %148 = arith.divf %144, %147 : vector<2x16xf32>
    %149 = arith.addf %141, %148 : vector<2x16xf32>
    %cst_83 = arith.constant 5.000000e-01 : f32
    %150 = vector.broadcast %cst_83 : f32 to vector<2x16xf32>
    %151 = arith.subf %149, %150 : vector<2x16xf32>
    %cst_84 = arith.constant dense<0.000000e+00> : vector<2xf32>
    %152 = vector.multi_reduction <add>, %151, %cst_84 [1] : vector<2x16xf32> to vector<2xf32>
    %153 = vector.shape_cast %152 : vector<2xf32> to vector<2x1xf32>
    %cst_85 = arith.constant dense<0.000000e+00> : vector<1xf32>
    %154 = vector.multi_reduction <add>, %153, %cst_85 [0] : vector<2x1xf32> to vector<1xf32>
    %155 = vector.shape_cast %154 : vector<1xf32> to vector<1x1xf32>
    %cst_86 = arith.constant 5.000000e-01 : f32
    %156 = vector.broadcast %cst_86 : f32 to vector<1x1xf32>
    %157 = arith.mulf %155, %156 : vector<1x1xf32>
    %cst_87 = arith.constant 1.000000e+00 : f32
    %158 = vector.broadcast %cst_87 : f32 to vector<1x1xf32>
    %159 = arith.mulf %158, %157 : vector<1x1xf32>
    %160 = arith.subf %106, %159 : vector<1x1xf32>
    %161 = tpu.iota {dimensions = array<i32: 1>} : vector<1x128xi32>
    %c0_i32_88 = arith.constant 0 : i32
    %162 = vector.broadcast %c0_i32_88 : i32 to vector<1x128xi32>
    %163 = arith.cmpi eq, %161, %162 : vector<1x128xi32>
    %c1_i32 = arith.constant 1 : i32
    %164 = vector.broadcast %c1_i32 : i32 to vector<1x128xi32>
    %165 = arith.cmpi eq, %161, %164 : vector<1x128xi32>
    %c2_i32 = arith.constant 2 : i32
    %166 = vector.broadcast %c2_i32 : i32 to vector<1x128xi32>
    %167 = arith.cmpi eq, %161, %166 : vector<1x128xi32>
    %cst_89 = arith.constant 0.000000e+00 : f32
    %168 = vector.shape_cast %157 : vector<1x1xf32> to vector<1x1xf32>
    %169 = vector.broadcast %168 : vector<1x1xf32> to vector<1x128xf32>
    %170 = vector.broadcast %cst_89 : f32 to vector<1x128xf32>
    %171 = arith.select %167, %169, %170 : vector<1x128xi1>, vector<1x128xf32>
    %172 = vector.shape_cast %106 : vector<1x1xf32> to vector<1x1xf32>
    %173 = vector.broadcast %172 : vector<1x1xf32> to vector<1x128xf32>
    %174 = arith.select %165, %173, %171 : vector<1x128xi1>, vector<1x128xf32>
    %175 = vector.shape_cast %160 : vector<1x1xf32> to vector<1x1xf32>
    %176 = vector.broadcast %175 : vector<1x1xf32> to vector<1x128xf32>
    %177 = arith.select %163, %176, %174 : vector<1x128xi1>, vector<1x128xf32>
    %c0_90 = arith.constant 0 : index
    %c0_91 = arith.constant 0 : index
    %c0_92 = arith.constant 0 : index
    %178 = vector.load %arg26[%c0_90, %c0_91, %c0_92] : memref<1x1x128xf32, #tpu.memory_space<vmem>>, vector<1x1x128xf32>
    %179 = vector.shape_cast %178 : vector<1x1x128xf32> to vector<1x128xf32>
    %180 = vector.shape_cast %177 : vector<1x128xf32> to vector<1x1x128xf32>
    tpu.vector_store %arg26[%c0_90, %c0_91, %c0_92], %180 {strides = array<i32>} : memref<1x1x128xf32, #tpu.memory_space<vmem>>, vector<1x1x128xf32>,
    %181 = tpu.concatenate %79, %72 in 1 : vector<2x16xf32>, vector<2x16xf32> -> vector<2x32xf32>
    %c0_93 = arith.constant 0 : index
    %c0_94 = arith.constant 0 : index
    %c0_95 = arith.constant 0 : index
    %182 = vector.load %arg27[%c0_93, %c0_94, %c0_95] : memref<1x2x32xf32, #tpu.memory_space<vmem>>, vector<1x2x32xf32>
    %183 = vector.shape_cast %182 : vector<1x2x32xf32> to vector<2x32xf32>
    %184 = vector.shape_cast %181 : vector<2x32xf32> to vector<1x2x32xf32>
    tpu.vector_store %arg27[%c0_93, %c0_94, %c0_95], %184 {strides = array<i32>} : memref<1x2x32xf32, #tpu.memory_space<vmem>>, vector<1x2x32xf32>,
    %c0_96 = arith.constant 0 : index
    %c0_97 = arith.constant 0 : index
    %185 = vector.load %arg28[%c0_96, %c0_97] : memref<2x16xf32, #tpu.memory_space<vmem>>, vector<2x16xf32>
    tpu.vector_store %arg28[%c0_96, %c0_97], %79 {strides = array<i32>} : memref<2x16xf32, #tpu.memory_space<vmem>>, vector<2x16xf32>,
    %c0_98 = arith.constant 0 : index
    %c0_99 = arith.constant 0 : index
    %186 = vector.load %arg29[%c0_98, %c0_99] : memref<2x16xf32, #tpu.memory_space<vmem>>, vector<2x16xf32>
    tpu.vector_store %arg29[%c0_98, %c0_99], %72 {strides = array<i32>} : memref<2x16xf32, #tpu.memory_space<vmem>>, vector<2x16xf32>,
    return
  }
  func.func @transform_0(%arg0: i32) -> (i32, i32) {
    %c0_i32 = arith.constant 0 : i32
    %c0_i32_0 = arith.constant 0 : i32
    %c0_i32_1 = arith.constant 0 : i32
    return %c0_i32, %c0_i32_0 : i32, i32
  }
  func.func @transform_1(%arg0: i32) -> (i32, i32, i32) {
    %c0_i32 = arith.constant 0 : i32
    %c0_i32_0 = arith.constant 0 : i32
    %c0_i32_1 = arith.constant 0 : i32
    return %arg0, %c0_i32, %c0_i32_0 : i32, i32, i32
  }
  func.func @transform_2(%arg0: i32) -> (i32, i32, i32) {
    %c0_i32 = arith.constant 0 : i32
    %c0_i32_0 = arith.constant 0 : i32
    %c0_i32_1 = arith.constant 0 : i32
    return %arg0, %c0_i32, %c0_i32_0 : i32, i32, i32
  }
  func.func @transform_3(%arg0: i32) -> (i32, i32, i32) {
    %c0_i32 = arith.constant 0 : i32
    %c0_i32_0 = arith.constant 0 : i32
    %c0_i32_1 = arith.constant 0 : i32
    return %arg0, %c0_i32, %c0_i32_0 : i32, i32, i32
  }
  func.func @transform_4(%arg0: i32) -> (i32, i32) {
    %c0_i32 = arith.constant 0 : i32
    %c0_i32_0 = arith.constant 0 : i32
    %c0_i32_1 = arith.constant 0 : i32
    return %c0_i32, %c0_i32_0 : i32, i32
  }
  func.func @transform_5(%arg0: i32) -> (i32, i32) {
    %c0_i32 = arith.constant 0 : i32
    %c0_i32_0 = arith.constant 0 : i32
    %c0_i32_1 = arith.constant 0 : i32
    return %c0_i32, %c0_i32_0 : i32, i32
  }
  func.func @transform_6(%arg0: i32) -> (i32, i32) {
    %c0_i32 = arith.constant 0 : i32
    %c0_i32_0 = arith.constant 0 : i32
    %c0_i32_1 = arith.constant 0 : i32
    return %c0_i32, %c0_i32_0 : i32, i32
  }
  func.func @transform_7(%arg0: i32) -> (i32, i32) {
    %c0_i32 = arith.constant 0 : i32
    %c0_i32_0 = arith.constant 0 : i32
    %c0_i32_1 = arith.constant 0 : i32
    return %c0_i32, %c0_i32_0 : i32, i32
  }
  func.func @transform_8(%arg0: i32) -> (i32, i32) {
    %c0_i32 = arith.constant 0 : i32
    %c0_i32_0 = arith.constant 0 : i32
    %c0_i32_1 = arith.constant 0 : i32
    return %c0_i32, %c0_i32_0 : i32, i32
  }
  func.func @transform_9(%arg0: i32) -> (i32, i32) {
    %c0_i32 = arith.constant 0 : i32
    %c0_i32_0 = arith.constant 0 : i32
    %c0_i32_1 = arith.constant 0 : i32
    return %c0_i32, %c0_i32_0 : i32, i32
  }
  func.func @transform_10(%arg0: i32) -> (i32, i32) {
    %c0_i32 = arith.constant 0 : i32
    %c0_i32_0 = arith.constant 0 : i32
    %c0_i32_1 = arith.constant 0 : i32
    return %c0_i32, %c0_i32_0 : i32, i32
  }
  func.func @transform_11(%arg0: i32) -> (i32, i32) {
    %c0_i32 = arith.constant 0 : i32
    %c0_i32_0 = arith.constant 0 : i32
    %c0_i32_1 = arith.constant 0 : i32
    return %c0_i32, %c0_i32_0 : i32, i32
  }
  func.func @transform_12(%arg0: i32) -> (i32, i32) {
    %c0_i32 = arith.constant 0 : i32
    %c0_i32_0 = arith.constant 0 : i32
    %c0_i32_1 = arith.constant 0 : i32
    return %c0_i32, %c0_i32_0 : i32, i32
  }
  func.func @transform_13(%arg0: i32) -> (i32, i32) {
    %c0_i32 = arith.constant 0 : i32
    %c0_i32_0 = arith.constant 0 : i32
    %c0_i32_1 = arith.constant 0 : i32
    return %c0_i32, %c0_i32_0 : i32, i32
  }
  func.func @transform_14(%arg0: i32) -> (i32, i32) {
    %c0_i32 = arith.constant 0 : i32
    %c0_i32_0 = arith.constant 0 : i32
    %c0_i32_1 = arith.constant 0 : i32
    return %c0_i32, %c0_i32_0 : i32, i32
  }
  func.func @transform_15(%arg0: i32) -> (i32, i32) {
    %c0_i32 = arith.constant 0 : i32
    %c0_i32_0 = arith.constant 0 : i32
    %c0_i32_1 = arith.constant 0 : i32
    return %c0_i32, %c0_i32_0 : i32, i32
  }
  func.func @transform_16(%arg0: i32) -> (i32, i32) {
    %c0_i32 = arith.constant 0 : i32
    %c0_i32_0 = arith.constant 0 : i32
    %c0_i32_1 = arith.constant 0 : i32
    return %c0_i32, %c0_i32_0 : i32, i32
  }
  func.func @transform_17(%arg0: i32) -> (i32, i32) {
    %c0_i32 = arith.constant 0 : i32
    %c0_i32_0 = arith.constant 0 : i32
    %c0_i32_1 = arith.constant 0 : i32
    return %c0_i32, %c0_i32_0 : i32, i32
  }
  func.func @transform_18(%arg0: i32) -> (i32, i32) {
    %c0_i32 = arith.constant 0 : i32
    %c0_i32_0 = arith.constant 0 : i32
    %c0_i32_1 = arith.constant 0 : i32
    return %c0_i32, %c0_i32_0 : i32, i32
  }
  func.func @transform_19(%arg0: i32) -> (i32, i32) {
    %c0_i32 = arith.constant 0 : i32
    %c0_i32_0 = arith.constant 0 : i32
    %c0_i32_1 = arith.constant 0 : i32
    return %c0_i32, %c0_i32_0 : i32, i32
  }
  func.func @transform_20(%arg0: i32) -> (i32, i32) {
    %c0_i32 = arith.constant 0 : i32
    %c0_i32_0 = arith.constant 0 : i32
    %c0_i32_1 = arith.constant 0 : i32
    return %c0_i32, %c0_i32_0 : i32, i32
  }
  func.func @transform_21(%arg0: i32) -> (i32, i32) {
    %c0_i32 = arith.constant 0 : i32
    %c0_i32_0 = arith.constant 0 : i32
    %c0_i32_1 = arith.constant 0 : i32
    return %c0_i32, %c0_i32_0 : i32, i32
  }
  func.func @transform_22(%arg0: i32) -> (i32, i32) {
    %c0_i32 = arith.constant 0 : i32
    %c0_i32_0 = arith.constant 0 : i32
    %c0_i32_1 = arith.constant 0 : i32
    return %c0_i32, %c0_i32_0 : i32, i32
  }
  func.func @transform_23(%arg0: i32) -> (i32, i32) {
    %c0_i32 = arith.constant 0 : i32
    %c0_i32_0 = arith.constant 0 : i32
    %c0_i32_1 = arith.constant 0 : i32
    return %c0_i32, %c0_i32_0 : i32, i32
  }
  func.func @transform_24(%arg0: i32) -> (i32, i32) {
    %c0_i32 = arith.constant 0 : i32
    %c0_i32_0 = arith.constant 0 : i32
    %c0_i32_1 = arith.constant 0 : i32
    return %c0_i32, %c0_i32_0 : i32, i32
  }
  func.func @transform_25(%arg0: i32) -> (i32, i32, i32) {
    %c0_i32 = arith.constant 0 : i32
    %c0_i32_0 = arith.constant 0 : i32
    %c0_i32_1 = arith.constant 0 : i32
    return %arg0, %c0_i32, %c0_i32_0 : i32, i32, i32
  }
  func.func @transform_26(%arg0: i32) -> (i32, i32, i32) {
    %c0_i32 = arith.constant 0 : i32
    %c0_i32_0 = arith.constant 0 : i32
    %c0_i32_1 = arith.constant 0 : i32
    return %arg0, %c0_i32, %c0_i32_0 : i32, i32, i32
  }
}

</mosaic_0001>

<bundles_post_ra>
// kernel: tpu_custom_call.1
= control target key start
LH: loop header
LB: loop body
LE: loop exit
PB: predicated region body
PF: predicated region fallthrough
CT: control target
= control target key end

     0   :  { %s4615_s0 = inlined_call_operand.<no memory space> [shape: f32[1,1], index: 0, kind: input, shape index: {}]   ;;  %s4616_s1 = inlined_call_operand.vmem [shape: f32[8,2,1024], index: 1, kind: input, shape index: {}]   ;;  %s4617_s2 = inlined_call_operand.vmem [shape: f32[8,2,16], index: 2, kind: input, shape index: {}]   ;;  %s4618_s3 = inlined_call_operand.vmem [shape: f32[8,2,16], index: 3, kind: input, shape index: {}]   ;;  %s4619_s4 = inlined_call_operand.vmem [shape: f32[2,16], index: 4, kind: input, shape index: {}]   ;;  %s4620_s5 = inlined_call_operand.vmem [shape: f32[2,16], index: 5, kind: input, shape index: {}]   ;;  %s4621_s6 = inlined_call_operand.vmem [shape: bf16[48,128], index: 6, kind: input, shape index: {}]   ;;  %s4622_s7 = inlined_call_operand.vmem [shape: f32[1,128], index: 7, kind: input, shape index: {}]   ;;  %s4623_s8 = inlined_call_operand.vmem [shape: bf16[128,16], index: 8, kind: input, shape index: {}]   ;;  %s4624_s9 = inlined_call_operand.vmem [shape: bf16[128,16], index: 9, kind: input, shape index: {}]   ;;  %s4625_s10 = inlined_call_operand.vmem [shape: bf16[128,16], index: 10, kind: input, shape index: {}]   ;;  %s4626_s11 = inlined_call_operand.vmem [shape: f32[1,16], index: 11, kind: input, shape index: {}]   ;;  %s4627_s12 = inlined_call_operand.vmem [shape: f32[1,16], index: 12, kind: input, shape index: {}]   ;;  %s4628_s13 = inlined_call_operand.vmem [shape: f32[1,16], index: 13, kind: input, shape index: {}]   ;;  %s4629_s14 = inlined_call_operand.vmem [shape: f32[1,16], index: 14, kind: input, shape index: {}]   ;;  %s4630_s15 = inlined_call_operand.hbm [shape: bf16[1024,128], index: 15, kind: input, shape index: {}]   ;;  %s4631_s16 = inlined_call_operand.vmem [shape: f32[1,128], index: 16, kind: input, shape index: {}]   ;;  %s4632_s17 = inlined_call_operand.vmem [shape: bf16[128,16], index: 17, kind: input, shape index: {}]   ;;  %s4633_s18 = inlined_call_operand.vmem [shape: f32[1,16], index: 18, kind: input, shape index: {}]   ;;  %s4634_s19 = inlined_call_operand.vmem [shape: bf16[128,16], index: 19, kind: input, shape index: {}]   ;;  %s4635_s20 = inlined_call_operand.vmem [shape: f32[1,16], index: 20, kind: input, shape index: {}]   ;;  %s4636_s21 = inlined_call_operand.vmem [shape: bf16[16,128], index: 21, kind: input, shape index: {}]   ;;  %s4637_s22 = inlined_call_operand.vmem [shape: f32[1,128], index: 22, kind: input, shape index: {}]   ;;  %s4638_s23 = inlined_call_operand.hbm [shape: bf16[128,1024], index: 23, kind: input, shape index: {}]   ;;  %s4639_s24 = inlined_call_operand.vmem [shape: f32[1,1024], index: 24, kind: input, shape index: {}]   ;;  %s4640_s25 = inlined_call_operand.hbm [shape: f32[8,1,128], index: 25, kind: output, shape index: {0}]   ;;  %s4641_s26 = inlined_call_operand.hbm [shape: f32[8,2,32], index: 26, kind: output, shape index: {1}]  }
   0x1   :  { %4658 = sst [smem:[#allocation26_spill]] %s4615_s0 }
   0x2   :  { %4659 = sst [smem:[#allocation27_spill]] %s4616_s1 }
   0x3   :  { %4660 = sst [smem:[#allocation28_spill]] %s4617_s2 }
   0x4   :  { %4661 = sst [smem:[#allocation29_spill]] %s4618_s3 }
   0x5   :  { %4662 = sst [smem:[#allocation30_spill]] %s4619_s4 }
   0x6   :  { %4663 = sst [smem:[#allocation31_spill]] %s4620_s5 }
   0x7   :  { %4664 = sst [smem:[#allocation32_spill]] %s4621_s6 }
   0x8   :  { %4665 = sst [smem:[#allocation33_spill]] %s4622_s7 }
   0x9   :  { %4666 = sst [smem:[#allocation34_spill]] %s4623_s8 }
   0xa   :  { %4667 = sst [smem:[#allocation35_spill]] %s4624_s9 }
   0xb   :  { %4668 = sst [smem:[#allocation36_spill]] %s4625_s10 }
   0xc   :  { %4669 = sst [smem:[#allocation37_spill]] %s4626_s11 }
   0xd   :  { %4670 = sst [smem:[#allocation38_spill]] %s4627_s12 }
   0xe   :  { %4671 = sst [smem:[#allocation39_spill]] %s4630_s15 }
   0xf   :  { %4672 = sst [smem:[#allocation40_spill]] %s4633_s18 }
  0x10   :  { %4673 = sst [smem:[#allocation41_spill]] %s4635_s20 }
  0x11   :  { %4674 = sst [smem:[#allocation42_spill]] %s4638_s23 }
  0x12   :  { %4675 = sst [smem:[#allocation43_spill]] %s4640_s25 }
  0x13   :  { %4676 = sst [smem:[#allocation44_spill]] %s4641_s26 }
  0x14   :  { %s4677_s7 = sld [smem:[#allocation26_spill]] }
  0x1a   :  { %32 = sst [smem:[#allocation5]] %s4677_s7 }
  0x1b   :  { %33 = vsyncpa [#allocation7], 0 }
  0x1c   :  { %34 = vsyncpa [#allocation10], 0 }
  0x1d   :  { %35 = vsyncpa [#allocation8], 0 }
  0x1e   :  { %37 = vsyncpa [#allocation8 + $0x1], 0 }
  0x1f   :  { %38 = vsyncpa [#allocation13], 0 }
  0x20   :  { %40 = vsyncpa [#allocation13 + $0x1], 0  ;;  %s4227_s28 = smov 0   ;;  %s4229_s8 = smov 0  }
  0x21   :  { %s4231_s4 = smov 0   ;;  %s4233_s29 = smov 0  }
  0x22 LB: > { %4678 = sst [smem:[#allocation18_spill]] %s4067_s28  ;;  %s4248_s0 = sadd.s32 4294967295, %s4079_s29   ;;  %s4079_s29 = sphi %s4233_s29, %s4714_s29   ;;  %s4075_s4 = sphi %s4231_s4, %s4717_s4   ;;  %s4071_s8 = sphi %s4229_s8, %s4716_s8   ;;  %s4067_s28 = sphi %s4227_s28, %s4715_s28  }
  0x23   : > { %4679 = sst [smem:[#allocation19_spill]] %s4071_s8  ;;  %s2932_s9 = sadd.s32 4294967294, %s4079_s29  }
  0x24   : > { %4680 = sst [smem:[#allocation20_spill]] %s4075_s4  ;;  %s4252_s30 = sadd.s32 1, %s4079_s29  }
  0x25   : > { %4681 = sst [smem:[#allocation21_spill]] %s4079_s29  ;;  %s593_s2 = sadd.s32 1, %s4075_s4 }
  0x26   : > { %4682 = sst [smem:[#allocation22_spill]] %s4252_s30  ;;  %s590_s5 = ssub.s32 %s4079_s29, %s4252_s30 }
  0x27   : > { %p603_p0 = scmp.ne.s32.totalorder %s4075_s4, %s4071_s8  ;;  %p591_p1 = scmp.eq.s32.totalorder %s590_s5, 0 }
  0x28   : > { %p604_p2 = scmp.eq.s32.totalorder %s4248_s0, 7  ;;  %p609_p3 = scmp.ne.s32.totalorder %s4071_s8, %s4067_s28 }
  0x29   : > { %p610_p4 = scmp.eq.s32.totalorder %s2932_s9, 7  ;;  %p2933_p7 = scmp.ge.s32.totalorder %s4079_s29, 1 }
  0x2a   : > { %s4263_s10 = scalar_select %p591_p1, %s4075_s4, %s593_s2  }
  0x2b   : > { %p4265_p5 = por %p604_p2, %p603_p0  ;;  %p4269_p6 = por %p610_p4, %p609_p3 }
  0x2c   : > { %4683 = sst [smem:[#allocation23_spill]] %s4263_s10  ;;  %p643_p8 = scmp.lt.s32.totalorder %s4079_s29, 9 }
  0x2d   : > { %s4684_s6 = scalar_select %p4265_p5, 1, 0 }
  0x2e   : > { %s4686_s1 = scalar_select %p4269_p6, 1, 0 }
  0x2f   : > { %4685 = sst [smem:[#allocation24_spill]] %s4684_s6  ;;  %p2934_p9 = scmp.ne.s32.totalorder %s4248_s0, 0 }
  0x30   : > { %4687 = sst [smem:[#allocation25_spill]] %s4686_s1  ;;  %p3840_p10 = scmp.eq.s32.totalorder %s4248_s0, 0 }
  0x31   : > { %p4277_p11 = pnand %p2933_p7, %p643_p8  ;;  %s4689_s15 = sld [smem:[#allocation39_spill]] }
  0x32   : > { %s4081_s2 = smov [#allocation6]   ;;  %s4690_s23 = sld [smem:[#allocation42_spill]] }
  0x33   : > { %p3826_p12 = pneg %p4277_p11  ;;  %s692_s5 = sshll.u32 %s4081_s2, 4  ;;  %s693_s5 = int_to_ptr.vmem [resolvable:$true] %s692_s5 }
  0x34   : > { %s4082_s1 = smov 64   ;;  %s4083_s28 = smov 4  }
  0x35   : > { %p3827_p13 = pnand %p3840_p10, %p3826_p12  ;;  %s4084_s29 = smov [#allocation9]  }
  0x36   : > { %s727_s3 = sshll.u32 %s4084_s29, 4  ;;  %s4085_s7 = smov 512   ;;  %s728_s3 = int_to_ptr.vmem [resolvable:$true] %s727_s3 }
  0x37   : > { %s690_s9 = sshll.u32 %s4689_s15, 4  ;;  %s4086_s15 = smov 32   ;;  %s691_s9 = int_to_ptr.hbm [resolvable:$true] %s690_s9 }
  0x38   : > { %s725_s30 = sshll.u32 %s4690_s23, 4  ;;  %768 = sbr.rel (%p4277_p11) target bundleno = 1293 (0x50d), region = 120  ;;  %s726_s30 = int_to_ptr.hbm [resolvable:$true] %s725_s30 }
  0x39   : > { %3829 = dma.hbm_to_vmem [thread:$0]  (!%p3827_p13), %s691_s9, 8192, %s693_s5, [#allocation7], %s4082_s1, %s4082_s1, %s4083_s28  }
  0x3a   : > { %3832 = dma.hbm_to_vmem [thread:$0]  (!%p3827_p13), %s726_s30, 8192, %s728_s3, [#allocation10], %s4085_s7, %s4085_s7, %s4086_s15  }
  0x3d   : > { %4050 = dma.done.wait (%p3840_p10), [#allocation7], 8192  }
  0x3e   : > { %4052 = vsyncadd (%p3840_p10), [#allocation7], 4294959104 }
  0x3f   : > { %4054 = dma.done.wait (%p3840_p10), [#allocation10], 8192  }
  0x40   : > { %4056 = vsyncadd (%p3840_p10), [#allocation10], 4294959104  ;;  %s4302_s28 = sand.u32 1, %s4071_s8   ;;  %p856_p0 = scmp.lt.s32.totalorder %s4248_s0, 7 }
  0x41   : > { %s2940_s15 = sshll.u32 %s4302_s28, 1  ;;  %s4691_s27 = sld [smem:[#allocation27_spill]] }
  0x42   : > { %s857_s4 = scalar_select %p856_p0, %s4248_s0, 7 }
  0x43   : > { %s4692_s3 = sld [smem:[#allocation28_spill]]  ;;  %s4321_s18 = scalar_lea.vmem [#allocation12], %s2940_s15 }
  0x44   : > { %s3641_s29 = sshll.u32 %s857_s4, 4  ;;  %s2943_s30 = sshll.u32 %s857_s4, 1 }
  0x45   : > { %s4693_s8 = sld [smem:[#allocation29_spill]] }
  0x46   : > { %s4694_s10 = sld [smem:[#allocation30_spill]] (!%p2934_p9) }
  0x47   : > { %s4310_s9 = scalar_lea.vmem %s4691_s27, %s3641_s29  ;;  %873 = sbr.rel (%p2934_p9) target bundleno = 88 (0x58), region = 132 }
  0x48   : > { %s4695_s27 = sld [smem:[#allocation31_spill]] (!%p2934_p9) }
  0x49   : > { %s864_s7 = scalar_lea.vmem %s4692_s3, %s2943_s30 }
  0x4b   : > { %s4318_s26 = scalar_lea.vmem %s4693_s8, %s2943_s30 }
  0x4c   : > { %v874_v0 = vld [vmem:[%s4694_s10] sm:$0x3]  ;;  %vm875_vm0 = vcmask 123904   ;;  %vm882_vm1 = vcmask 122880  }
  0x4d   : > { %876 = vst.msk [vmem:[#allocation2] sm:$0x3] %vm875_vm0, %v874_v0  ;;  %v879_v2 = vld [vmem:[%s4629_s14] sm:$0x1] }
  0x4e   : > { %v877_v1 = vld [vmem:[%s4695_s27] sm:$0x3]  ;;  %v880_v3 = vmul.f32 1.442695, %v879_v2 }
  0x4f   : > { %878 = vst.msk [vmem:[#allocation3] sm:$0x3] %vm875_vm0, %v877_v1 }
  0x50   : > { %3885 = vpow2.f32 %v880_v3 }
  0x56   : > { %v3886_v4 = vpop.eup %3885 }
  0x57   : > { %883 = vst.msk [vmem:[#allocation4] sm:$0x1] %vm882_vm1, %v3886_v4 }
  0x58 PF: > { %v4334_v5 = vld [vmem:[#allocation3] sm:$0x3]  ;;  %s4087_s20 = smov 16   ;;  %v4338_v6 = vld [vmem:[%s864_s7] sm:$0x3]  ;;  %s4088_s25 = smov 32  }
  0x59   : > { %892 = vrot.lane.b32.xlu0 %v4334_v5, %s4087_s20  ;;  %s4696_s30 = sld [smem:[#allocation32_spill]]  ;;  %vm899_vm2 = vcmask 130048   ;;  %v4404_v29 = vld [vmem:[#allocation2] sm:$0x3]  ;;  %vm901_vm3 = vcmask 261120   ;;  %vm932_vm4 = vcmask 392192  }
  0x5a   : > { %s4697_s1 = sld [smem:[#allocation34_spill]]  ;;  %v3890_v51 = vld [vmem:[%s4628_s13] ss:$0 sm:$0xff]  ;;  %vm2735_vm8 = vcmask 123904   ;;  %vm2762_vm9 = vcmask 254976   ;;  %vm1808_vm10 = vcmask 1041408  }
  0x5b   : > { %s4698_s23 = sld [smem:[#allocation35_spill]]  ;;  %v3669_v59 = vld [vmem:[%s4636_s21] sm:$0xff]  ;;  %vm1810_vm11 = vcmask 1045508   ;;  %vm1812_vm12 = vcmask 1043456   ;;  %s3638_s8 = sshll.u32 %s4248_s0, 1 }
  0x5c   : > { %s4699_s15 = sld [smem:[#allocation36_spill]]  ;;  %s2771_s29 = scalar_lea.sflag [#allocation13], %s4302_s28 }
  0x5d   : > { %s4700_s7 = sld [smem:[#allocation33_spill]] }
  0x5e   : > { %s4701_s11 = sld [smem:[#allocation37_spill]] }
  0x5f   : > { %v3644_v7 = vld [vmem:[%s4696_s30 + $0x10] sm:$0xff]  ;;  %v3643_v8 = vld [vmem:[%s4696_s30 + $0x8] sm:$0xff]  ;;  %v3642_v9 = vld [vmem:[%s4696_s30] sm:$0xff]  ;;  %s4702_s12 = sld [smem:[#allocation38_spill]] }
  0x60   : > { %941 = vmatpush.bf16.msra.mxu0 %v3644_v7  ;;  %v3652_v10 = vld [vmem:[%s4697_s1 + $0x38] sm:$0xff]  ;;  %v3651_v13 = vld [vmem:[%s4697_s1 + $0x30] sm:$0xff]  ;;  %v3650_v16 = vld [vmem:[%s4697_s1 + $0x28] sm:$0xff]  ;;  %s884_s10 = sld [smem:[#allocation5]] }
  0x61   : > { %896 = vrot.lane.b32.xlu0 %v4338_v6, %s4088_s25  ;;  %v3660_v11 = vld [vmem:[%s4698_s23 + $0x38] sm:$0xff]  ;;  %1019 = vmatpush.bf16.msra.mxu1 %v3652_v10  ;;  %v3659_v14 = vld [vmem:[%s4698_s23 + $0x30] sm:$0xff]  ;;  %v3658_v17 = vld [vmem:[%s4698_s23 + $0x28] sm:$0xff]  ;;  %s4706_s4 = sld [smem:[#allocation44_spill]] }
  0x62   : > { %v3668_v12 = vld [vmem:[%s4699_s15 + $0x38] sm:$0xff]  ;;  %1116 = vmatpush.bf16.msra.mxu2 %v3660_v11  ;;  %v3667_v15 = vld [vmem:[%s4699_s15 + $0x30] sm:$0xff]  ;;  %v3666_v18 = vld [vmem:[%s4699_s15 + $0x28] sm:$0xff] }
  0x63   : > { %1213 = vmatpush.bf16.msra.mxu3 %v3668_v12  ;;  %v3649_v19 = vld [vmem:[%s4697_s1 + $0x20] sm:$0xff]  ;;  %v3648_v22 = vld [vmem:[%s4697_s1 + $0x18] sm:$0xff]  ;;  %v3647_v25 = vld [vmem:[%s4697_s1 + $0x10] sm:$0xff] }
  0x64   : > { %942 = vmatpush.bf16.msra.mxu0 %v3643_v8  ;;  %v3657_v20 = vld [vmem:[%s4698_s23 + $0x20] sm:$0xff]  ;;  %v3656_v23 = vld [vmem:[%s4698_s23 + $0x18] sm:$0xff]  ;;  %v3655_v26 = vld [vmem:[%s4698_s23 + $0x10] sm:$0xff] }
  0x65   : > { %1020 = vmatpush.bf16.msra.mxu1 %v3651_v13  ;;  %v3665_v21 = vld [vmem:[%s4699_s15 + $0x20] sm:$0xff]  ;;  %v3664_v24 = vld [vmem:[%s4699_s15 + $0x18] sm:$0xff]  ;;  %v3663_v27 = vld [vmem:[%s4699_s15 + $0x10] sm:$0xff] }
  0x66   : > { %1117 = vmatpush.bf16.msra.mxu2 %v3659_v14  ;;  %v3646_v34 = vld [vmem:[%s4697_s1 + $0x8] sm:$0xff]  ;;  %v3645_v37 = vld [vmem:[%s4697_s1] sm:$0xff] }
  0x67   : > { %1214 = vmatpush.bf16.msra.mxu3 %v3667_v15  ;;  %v3654_v35 = vld [vmem:[%s4698_s23 + $0x8] sm:$0xff]  ;;  %v3653_v38 = vld [vmem:[%s4698_s23] sm:$0xff] }
  0x68   : > { %943 = vmatpush.bf16.msra.mxu0 %v3642_v9  ;;  %v3662_v36 = vld [vmem:[%s4699_s15 + $0x8] sm:$0xff]  ;;  %v3661_v39 = vld [vmem:[%s4699_s15] sm:$0xff] }
  0x69   : > { %1021 = vmatpush.bf16.msra.mxu1 %v3650_v16  ;;  %v3887_v40 = vld [vmem:[%s4700_s7] ss:$0 sm:$0xff] }
  0x6a   : > { %1118 = vmatpush.bf16.msra.mxu2 %v3658_v17  ;;  %v3888_v46 = vld [vmem:[%s4701_s11] ss:$0 sm:$0xff] }
  0x6b   : > { %1215 = vmatpush.bf16.msra.mxu3 %v3666_v18  ;;  %v3889_v50 = vld [vmem:[%s4702_s12] ss:$0 sm:$0xff] }
  0x6c   : > { %1280 = vmatpush.bf16.msrb.mxu0 %v3669_v59  ;;  %v3288_v59 = vld [vmem:[#allocation9 + $0x1e0] sm:$0xf0] }
  0x6d   : > { %1022 = vmatpush.bf16.msra.mxu1 %v3649_v19 }
  0x6e   : > { %1119 = vmatpush.bf16.msra.mxu2 %v3657_v20 }
  0x6f   : > { %1216 = vmatpush.bf16.msra.mxu3 %v3665_v21 }
  0x71   : > { %1023 = vmatpush.bf16.msra.mxu1 %v3648_v22 }
  0x72   : > { %1120 = vmatpush.bf16.msra.mxu2 %v3656_v23 }
  0x73   : > { %1217 = vmatpush.bf16.msra.mxu3 %v3664_v24 }
  0x75   : > { %1024 = vmatpush.bf16.msra.mxu1 %v3647_v25 }
  0x76   : > { %1121 = vmatpush.bf16.msra.mxu2 %v3655_v26 }
  0x77   : > { %1218 = vmatpush.bf16.msra.mxu3 %v3663_v27 }
  0x79   : > { %1025 = vmatpush.bf16.msra.mxu1 %v3646_v34 }
  0x7a   : > { %1122 = vmatpush.bf16.msra.mxu2 %v3654_v35 }
  0x7b   : > { %1219 = vmatpush.bf16.msra.mxu3 %v3662_v36 }
  0x7d   : > { %1026 = vmatpush.bf16.msra.mxu1 %v3645_v37 }
  0x7e   : > { %1123 = vmatpush.bf16.msra.mxu2 %v3653_v38 }
  0x7f   : > { %1220 = vmatpush.bf16.msra.mxu3 %v3661_v39 }
  0xcb   : > { %v893_v28 = vpop.permute.xlu0 %892 }
  0xcc   : > { %v900_v30 = vsel %vm899_vm2, %v4404_v29, %v893_v28 }
  0xd3   : > { %v897_v31 = vpop.permute.xlu0 %896 }
  0xd4   : > { %v902_v32 = vsel %vm901_vm3, %v900_v30, %v897_v31 }
  0xd5   : > { %v903_v33 = vpack.c.bf16 %v902_v32, %v902_v32 }
  0xd7   : > { %2958 = vmatmul.msk.bf16.vlgmr.msra.gmra.mxu0 %vm932_vm4, %v903_v33 }
 0x154   : > { %v945_v41 = vpop.f32.mrf.mxu0 }
 0x155   : > { %v946_v42 = vadd.f32 %v3887_v40, %v945_v41 }
 0x157   : > { %v949_v43 = vmax.f32 %v946_v42, 0.0 }
 0x159   : > { %v950_v44 = vpack.c.bf16 %v949_v43, %v949_v43 }
 0x15b   : > { %1027 = vmatmul.bf16.vlgmr.msra.gmra.mxu1 %v950_v44  ;;  %1124 = vmatmul.bf16.vlgmr.msra.gmra.mxu2 %v950_v44 }
 0x15c   : > { %1221 = vmatmul.bf16.vlgmr.msra.gmra.mxu3 %v950_v44  ;;  %v947_v45 = vpop.f32.mrf.mxu0 }
 0x1d8   : > { %v1028_v47 = vpop.f32.mrf.mxu1 }
 0x1d9   : > { %v1029_v48 = vadd.f32 %v3888_v46, %v1028_v47  ;;  %v1246_v46 = vstv %s884_s10  ;;  %s4707_s10 = smov %s4706_s4 }
 0x1da   : > { %s3997_s1 = scalar_lea.hbm %s4707_s10, 16 }
 0x1db   : > { %v1033_v49 = vand.u32 2147483647, %v1029_v48  ;;  %v1032_v22 = vmax.f32 %v1029_v48, 0.0 }
 0x1dd   : > { %v1034_v52 = vsub.f32 0.0, %v1033_v49  ;;  %v3891_v49 = vld [vmem:[#allocation4] ss:$0 sm:$0xff] }
 0x1de   : > { %v1125_v53 = vpop.f32.mrf.mxu2 }
 0x1df   : > { %v1035_v54 = vmul.f32 1.442695, %v1034_v52  ;;  %v1126_v55 = vadd.f32 %v3889_v50, %v1125_v53  ;;  %v1222_v56 = vpop.f32.mrf.mxu3  ;;  %v888_v50 = vld [vmem:[%s4318_s26] sm:$0x3]  ;;  %s2794_s26 = scalar_lea.hbm %s4706_s4, %s3638_s8 }
 0x1e0   : > { %v1223_v57 = vadd.f32 %v3890_v51, %v1222_v56  ;;  %v1030_v58 = vpop.f32.mrf.mxu1  ;;  %v1255_v53 = vmul.f32 %v3891_v49, %v888_v50  ;;  %v3730_v56 = vld [vmem:[#allocation9 + $0x1dc] sm:$0xf0]  ;;  %s2798_s7 = sshll.u32 %s2794_s26, 4  ;;  %s2799_s7 = int_to_ptr.hbm [resolvable:$true] %s2798_s7 }
 0x1e1   : > { %3897 = vpow2.f32 %v1035_v54  ;;  %v1130_v60 = vand.u32 2147483647, %v1126_v55  ;;  %v1129_v32 = vmax.f32 %v1126_v55, 0.0 }
 0x1e2   : > { %v1227_v61 = vand.u32 2147483647, %v1223_v57  ;;  %v1226_v38 = vmax.f32 %v1223_v57, 0.0  ;;  %v3726_v57 = vld [vmem:[#allocation9 + $0x1c4] sm:$0xf] }
 0x1e3   : > { %v1131_v62 = vsub.f32 0.0, %v1130_v60  ;;  %v3294_v60 = vld [vmem:[#allocation9 + $0x1c8] sm:$0xf] }
 0x1e4   : > { %v1228_v63 = vsub.f32 0.0, %v1227_v61  ;;  %v3731_v61 = vld [vmem:[#allocation9 + $0x1e4] sm:$0xf0] }
 0x1e5   : > { %v1132_v0 = vmul.f32 1.442695, %v1131_v62  ;;  %v3295_v62 = vor.u32 %v3731_v61, %v3294_v60  ;;  %v3136_v60 = vld [vmem:[#allocation9 + $0xa8] sm:$0xf0] }
 0x1e6   : > { %v1229_v1 = vmul.f32 1.442695, %v1228_v63  ;;  %v1127_v2 = vpop.f32.mrf.mxu2  ;;  %v3727_v63 = vld [vmem:[#allocation9 + $0x1cc] sm:$0xf] }
 0x1e7   : > { %v3898_v3 = vpop.eup %3897  ;;  %3899 = vpow2.f32 %v1132_v0  ;;  %v1224_v4 = vpop.f32.mrf.mxu3  ;;  %v3296_v0 = vld [vmem:[#allocation9 + $0x1e8] sm:$0xf0]  ;;  %1716 = vmatpush.bf16.msrb.mxu2 %v3295_v62 }
 0x1e8   : > { %v1037_v7 = vadd.f32 1.0, %v3898_v3  ;;  %3901 = vpow2.f32 %v1229_v1  ;;  %v1040_v8 = vmul.f32 -0.5, %v3898_v3  ;;  %v1043_v12 = vand.u32 2147483647, %v3898_v3  ;;  %v3254_v1 = vld [vmem:[#allocation9 + $0x180] sm:$0xf] }
 0x1e9   : > { %v3299_v2 = vor.u32 %v3727_v63, %v3296_v0  ;;  %v3718_v4 = vld [vmem:[#allocation9 + $0x184] sm:$0xf]  ;;  %v3094_v63 = vld [vmem:[#allocation9 + $0x40] sm:$0xf] }
 0x1ea   : > { %3903 = vlog2.f32 %v1037_v7  ;;  %v1041_v10 = vadd.f32 1.0, %v1040_v8  ;;  %vm1044_vm5 = vcmp.lt.f32.partialorder %v1043_v12, 0.0004427343  ;;  %v3256_v7 = vld [vmem:[#allocation9 + $0x1a0] sm:$0xf0] }
 0x1eb   : > { %v3719_v12 = vld [vmem:[#allocation9 + $0x18c] sm:$0xf]  ;;  %1729 = vmatpush.bf16.msrb.mxu3 %v3299_v2  ;;  %v3682_v0 = vld [vmem:[#allocation9 + $0x5c] sm:$0xf0] }
 0x1ec   : > { %v1042_v19 = vmul.f32 %v3898_v3, %v1041_v10  ;;  %v3722_v3 = vld [vmem:[#allocation9 + $0x19c] sm:$0xf0]  ;;  %v3262_v10 = vld [vmem:[#allocation9 + $0x188] sm:$0xf] }
 0x1ed   : > { %v3900_v9 = vpop.eup %3899  ;;  %v3255_v8 = vor.u32 %v3722_v3, %v3254_v1  ;;  %v3678_v1 = vld [vmem:[#allocation9 + $0x44] sm:$0xf] }
 0x1ee   : > { %v3902_v11 = vpop.eup %3901  ;;  %v1134_v13 = vadd.f32 1.0, %v3900_v9  ;;  %v1137_v14 = vmul.f32 -0.5, %v3900_v9  ;;  %v1140_v23 = vand.u32 2147483647, %v3900_v9  ;;  %v3096_v3 = vld [vmem:[#allocation9 + $0x60] sm:$0xf0] }
 0x1ef   : > { %v1231_v15 = vadd.f32 1.0, %v3902_v11  ;;  %v1234_v17 = vmul.f32 -0.5, %v3902_v11  ;;  %v1237_v25 = vand.u32 2147483647, %v3902_v11 }
 0x1f0   : > { %v3904_v16 = vpop.eup %3903  ;;  %3905 = vlog2.f32 %v1134_v13  ;;  %v1138_v21 = vadd.f32 1.0, %v1137_v14  ;;  %vm1141_vm6 = vcmp.lt.f32.partialorder %v1140_v23, 0.0004427343  ;;  %v3264_v14 = vld [vmem:[#allocation9 + $0x1a8] sm:$0xf0] }
 0x1f1   : > { %v1039_v18 = vmul.f32 0.6931472, %v3904_v16  ;;  %3907 = vlog2.f32 %v1231_v15  ;;  %v1235_v24 = vadd.f32 1.0, %v1234_v17  ;;  %vm1238_vm7 = vcmp.lt.f32.partialorder %v1237_v25, 0.0004427343 }
 0x1f2   : > { %v1139_v31 = vmul.f32 %v3900_v9, %v1138_v21  ;;  %v3259_v9 = vor.u32 %v3718_v4, %v3256_v7  ;;  %v3222_v15 = vld [vmem:[#allocation9 + $0x140] sm:$0xf]  ;;  %v3267_v17 = vor.u32 %v3719_v12, %v3264_v14  ;;  %v3711_v23 = vld [vmem:[#allocation9 + $0x14c] sm:$0xf]  ;;  %v3102_v4 = vld [vmem:[#allocation9 + $0x48] sm:$0xf] }
 0x1f3   : > { %v1045_v20 = vsel %vm1044_vm5, %v1042_v19, %v1039_v18  ;;  %v1236_v34 = vmul.f32 %v3902_v11, %v1235_v24  ;;  %v3723_v11 = vld [vmem:[#allocation9 + $0x1a4] sm:$0xf0]  ;;  %v3714_v16 = vld [vmem:[#allocation9 + $0x15c] sm:$0xf0]  ;;  %v3710_v18 = vld [vmem:[#allocation9 + $0x144] sm:$0xf] }
 0x1f4   : > { %v1046_v27 = vadd.f32 %v1045_v20, %v1032_v22  ;;  %v3263_v13 = vor.u32 %v3723_v11, %v3262_v10  ;;  %v3224_v19 = vld [vmem:[#allocation9 + $0x160] sm:$0xf0]  ;;  %v3230_v20 = vld [vmem:[#allocation9 + $0x148] sm:$0xf]  ;;  %v3223_v21 = vor.u32 %v3714_v16, %v3222_v15  ;;  %v3232_v24 = vld [vmem:[#allocation9 + $0x168] sm:$0xf0]  ;;  %1730 = vmatpush.bf16.msrb.mxu3 %v3267_v17  ;;  %v3095_v10 = vor.u32 %v3682_v0, %v3094_v63 }
 0x1f5   : > { %v3715_v22 = vld [vmem:[#allocation9 + $0x164] sm:$0xf0]  ;;  %v3227_v25 = vor.u32 %v3710_v18, %v3224_v19  ;;  %v3062_v11 = vld [vmem:[#allocation9] sm:$0xf]  ;;  %v3670_v15 = vld [vmem:[#allocation9 + $0x4] sm:$0xf] }
 0x1f6   : > { %v3906_v26 = vpop.eup %3905  ;;  %v1047_v36 = vsub.f32 0.0, %v1046_v27  ;;  %1717 = vmatpush.bf16.msrb.mxu2 %v3263_v13  ;;  %v3190_v27 = vld [vmem:[#allocation9 + $0x100] sm:$0xf]  ;;  %v3683_v7 = vld [vmem:[#allocation9 + $0x64] sm:$0xf0]  ;;  %v3099_v13 = vor.u32 %v3678_v1, %v3096_v3 }
 0x1f7   : > { %v3908_v28 = vpop.eup %3907  ;;  %v1136_v30 = vmul.f32 0.6931472, %v3906_v26  ;;  %v3231_v26 = vor.u32 %v3715_v22, %v3230_v20  ;;  %v3674_v12 = vld [vmem:[#allocation9 + $0x1c] sm:$0xf0]  ;;  %v3103_v14 = vor.u32 %v3683_v7, %v3102_v4  ;;  %v3064_v16 = vld [vmem:[#allocation9 + $0x20] sm:$0xf0] }
 0x1f8   : > { %v1233_v33 = vmul.f32 0.6931472, %v3908_v28  ;;  %v1241_v42 = vmul.f32 %v1047_v36, %v4404_v29  ;;  %v3706_v28 = vld [vmem:[#allocation9 + $0x11c] sm:$0xf0]  ;;  %v3200_v36 = vld [vmem:[#allocation9 + $0x128] sm:$0xf0] }
 0x1f9   : > { %v1142_v35 = vsel %vm1141_vm6, %v1139_v31, %v1136_v30  ;;  %v3702_v30 = vld [vmem:[#allocation9 + $0x104] sm:$0xf]  ;;  %v3235_v31 = vor.u32 %v3711_v23, %v3232_v24  ;;  %v3070_v17 = vld [vmem:[#allocation9 + $0x8] sm:$0xf]  ;;  %v3671_v20 = vld [vmem:[#allocation9 + $0xc] sm:$0xf] }
 0x1fa   : > { %v1143_v37 = vadd.f32 %v1142_v35, %v1129_v32  ;;  %v1239_v39 = vsel %vm1238_vm7, %v1236_v34, %v1233_v33  ;;  %v3192_v32 = vld [vmem:[#allocation9 + $0x120] sm:$0xf0]  ;;  %v3198_v33 = vld [vmem:[#allocation9 + $0x108] sm:$0xf]  ;;  %v3703_v35 = vld [vmem:[#allocation9 + $0x10c] sm:$0xf]  ;;  %1718 = vmatpush.bf16.msrb.mxu2 %v3231_v26 }
 0x1fb   : > { %v1240_v41 = vadd.f32 %v1239_v39, %v1226_v38  ;;  %v3707_v34 = vld [vmem:[#allocation9 + $0x124] sm:$0xf0]  ;;  %v3195_v38 = vor.u32 %v3702_v30, %v3192_v32  ;;  %1731 = vmatpush.bf16.msrb.mxu3 %v3235_v31  ;;  %v3302_v22 = vld [vmem:[#allocation9 + $0x1d0] sm:$0xf]  ;;  %v3728_v24 = vld [vmem:[#allocation9 + $0x1d4] sm:$0xf]  ;;  %v3067_v30 = vor.u32 %v3670_v15, %v3064_v16 }
 0x1fc   : > { %v1144_v40 = vsub.f32 0.0, %v1143_v37  ;;  %v3191_v37 = vor.u32 %v3706_v28, %v3190_v27  ;;  %v3199_v39 = vor.u32 %v3707_v34, %v3198_v33  ;;  %v3675_v19 = vld [vmem:[#allocation9 + $0x24] sm:$0xf0]  ;;  %v3732_v23 = vld [vmem:[#allocation9 + $0x1ec] sm:$0xf0] }
 0x1fd   : > { %v1244_v45 = vmul.f32 %v1240_v41, %v4338_v6  ;;  %v3698_v41 = vld [vmem:[#allocation9 + $0xdc] sm:$0xf0]  ;;  %v3304_v26 = vld [vmem:[#allocation9 + $0x1f0] sm:$0xf0]  ;;  %v3310_v27 = vld [vmem:[#allocation9 + $0x1d8] sm:$0xf]  ;;  %v3071_v31 = vor.u32 %v3675_v19, %v3070_v17 }
 0x1fe   : > { %v1242_v43 = vmul.f32 %v1144_v40, %v4334_v5  ;;  %v3158_v40 = vld [vmem:[#allocation9 + $0xc0] sm:$0xf]  ;;  %1719 = vmatpush.bf16.msrb.mxu2 %v3199_v39  ;;  %v3733_v28 = vld [vmem:[#allocation9 + $0x1f4] sm:$0xf0]  ;;  %v3729_v32 = vld [vmem:[#allocation9 + $0x1dc] sm:$0xf] }
 0x1ff   : > { %v3159_v49 = vor.u32 %v3698_v41, %v3158_v40  ;;  %v3312_v33 = vld [vmem:[#allocation9 + $0x1f8] sm:$0xf0]  ;;  %v3270_v39 = vld [vmem:[#allocation9 + $0x190] sm:$0xf]  ;;  %v3720_v41 = vld [vmem:[#allocation9 + $0x194] sm:$0xf] }
 0x200   : > { %v1243_v44 = vadd.f32 %v1242_v43, %v1241_v42  ;;  %v3694_v42 = vld [vmem:[#allocation9 + $0xc4] sm:$0xf]  ;;  %v3203_v43 = vor.u32 %v3703_v35, %v3200_v36  ;;  %v3303_v35 = vor.u32 %v3732_v23, %v3302_v22  ;;  %v3724_v40 = vld [vmem:[#allocation9 + $0x1ac] sm:$0xf0]  ;;  %v3704_v1 = vld [vmem:[#allocation9 + $0x114] sm:$0xf] }
 0x201   : > { %v3206_v63 = vld [vmem:[#allocation9 + $0x110] sm:$0xf]  ;;  %v3208_v3 = vld [vmem:[#allocation9 + $0x130] sm:$0xf0]  ;;  %v3214_v4 = vld [vmem:[#allocation9 + $0x118] sm:$0xf] }
 0x202   : > { %v1245_v47 = vadd.f32 %v1244_v45, %v1243_v44  ;;  %v3160_v44 = vld [vmem:[#allocation9 + $0xe0] sm:$0xf0]  ;;  %v3166_v45 = vld [vmem:[#allocation9 + $0xc8] sm:$0xf]  ;;  %1732 = vmatpush.bf16.msrb.mxu3 %v3203_v43  ;;  %v3315_v43 = vor.u32 %v3729_v32, %v3312_v33  ;;  %v3708_v0 = vld [vmem:[#allocation9 + $0x12c] sm:$0xf0] }
 0x203   : > { %v3163_v50 = vor.u32 %v3694_v42, %v3160_v44  ;;  %v3272_v44 = vld [vmem:[#allocation9 + $0x1b0] sm:$0xf0]  ;;  %v3709_v7 = vld [vmem:[#allocation9 + $0x134] sm:$0xf0]  ;;  %v3697_v22 = vld [vmem:[#allocation9 + $0xdc] sm:$0xf] }
 0x204   : > { %v1247_v48 = vmul.f32 %v1246_v46, %v1245_v47  ;;  %v3695_v47 = vld [vmem:[#allocation9 + $0xcc] sm:$0xf]  ;;  %v3696_v15 = vld [vmem:[#allocation9 + $0xd4] sm:$0xf]  ;;  %v3701_v19 = vld [vmem:[#allocation9 + $0xf4] sm:$0xf0] }
 0x205   : > { %v3176_v17 = vld [vmem:[#allocation9 + $0xf0] sm:$0xf0]  ;;  %v3184_v23 = vld [vmem:[#allocation9 + $0xf8] sm:$0xf0]  ;;  %v3150_v32 = vld [vmem:[#allocation9 + $0x98] sm:$0xf] }
 0x206   : > { %v1248_v51 = vadd.f32 %v1247_v48, %v4334_v5  ;;  %v3286_v5 = vld [vmem:[#allocation9 + $0x1c0] sm:$0xf]  ;;  %v3168_v48 = vld [vmem:[#allocation9 + $0xe8] sm:$0xf0]  ;;  %v3693_v33 = vld [vmem:[#allocation9 + $0xb4] sm:$0xf0] }
 0x207   : > { %v3287_v58 = vor.u32 %v3730_v56, %v3286_v5  ;;  %v3171_v5 = vor.u32 %v3695_v47, %v3168_v48  ;;  %v3128_v56 = vld [vmem:[#allocation9 + $0xa0] sm:$0xf0]  ;;  %v3721_v47 = vld [vmem:[#allocation9 + $0x19c] sm:$0xf] }
 0x208   : > { %2758 = vrot.lane.b32.xlu2 %v1248_v51, %s4087_s20  ;;  %v1249_v52 = vmul.f32 %v1248_v51, %v1246_v46  ;;  %2765 = vst.msk [vmem:[#allocation3] sm:$0x3] %vm2735_vm8, %v1248_v51  ;;  %v3699_v46 = vld [vmem:[#allocation9 + $0xe4] sm:$0xf0]  ;;  %v3280_v48 = vld [vmem:[#allocation9 + $0x1b8] sm:$0xf0] }
 0x209   : > { %1690 = vmatpush.bf16.msra.mxu0 %v3287_v58  ;;  %v3167_v51 = vor.u32 %v3699_v46, %v3166_v45  ;;  %v3691_v58 = vld [vmem:[#allocation9 + $0xa4] sm:$0xf0]  ;;  %1733 = vmatpush.bf16.msrb.mxu3 %v3171_v5  ;;  %v3278_v45 = vld [vmem:[#allocation9 + $0x198] sm:$0xf]  ;;  %s4703_s20 = sld [smem:[#allocation41_spill]] }
 0x20a   : > { %v4449_v54 = vadd.f32 %v1249_v52, %v4404_v29  ;;  %v3291_v29 = vor.u32 %v3726_v57, %v3288_v59  ;;  %v3126_v52 = vld [vmem:[#allocation9 + $0x80] sm:$0xf]  ;;  %v3134_v57 = vld [vmem:[#allocation9 + $0x88] sm:$0xf]  ;;  %v3687_v59 = vld [vmem:[#allocation9 + $0x8c] sm:$0xf] }
 0x20b   : > { %1720 = vmatpush.bf16.msrb.mxu2 %v3167_v51  ;;  %v3135_v62 = vor.u32 %v3691_v58, %v3134_v57  ;;  %v3139_v2 = vor.u32 %v3687_v59, %v3136_v60  ;;  %v3725_v46 = vld [vmem:[#allocation9 + $0x1b4] sm:$0xf0] }
 0x20c   : > { %v4452_v55 = vadd.f32 %v1255_v53, %v4449_v54  ;;  %1703 = vmatpush.bf16.msrb.mxu1 %v3291_v29  ;;  %v3690_v53 = vld [vmem:[#allocation9 + $0x9c] sm:$0xf0]  ;;  %v3279_v51 = vor.u32 %v3725_v46, %v3278_v45  ;;  %v3246_v57 = vld [vmem:[#allocation9 + $0x158] sm:$0xf]  ;;  %v3681_v45 = vld [vmem:[#allocation9 + $0x5c] sm:$0xf] }
 0x20d   : > { %1691 = vmatpush.bf16.msra.mxu0 %v3255_v8  ;;  %v3127_v61 = vor.u32 %v3690_v53, %v3126_v52  ;;  %v3679_v8 = vld [vmem:[#allocation9 + $0x4c] sm:$0xf]  ;;  %1734 = vmatpush.bf16.msrb.mxu3 %v3139_v2  ;;  %v3238_v52 = vld [vmem:[#allocation9 + $0x150] sm:$0xf]  ;;  %v3717_v58 = vld [vmem:[#allocation9 + $0x174] sm:$0xf0]  ;;  %v3207_v2 = vor.u32 %v3708_v0, %v3206_v63 }
 0x20e   : > { %v1257_v6 = vpack.c.bf16 %v4452_v55, %v4452_v55  ;;  %2764 = vst.msk [vmem:[#allocation2] sm:$0x3] %vm2735_vm8, %v4452_v55  ;;  %v3716_v53 = vld [vmem:[#allocation9 + $0x16c] sm:$0xf0]  ;;  %v3247_v60 = vor.u32 %v3717_v58, %v3246_v57  ;;  %v3120_v46 = vld [vmem:[#allocation9 + $0x78] sm:$0xf0] }
 0x20f   : > { %1721 = vmatpush.bf16.msrb.mxu2 %v3135_v62  ;;  %v3239_v5 = vor.u32 %v3716_v53, %v3238_v52  ;;  %v3080_v52 = vld [vmem:[#allocation9 + $0x30] sm:$0xf0]  ;;  %v3086_v53 = vld [vmem:[#allocation9 + $0x18] sm:$0xf] }
 0x210   : > { %3059 = vmatmul.msk.bf16.vlgmr.msrb.gmra.mxu0 %vm899_vm2, %v1257_v6  ;;  %1704 = vmatpush.bf16.msrb.mxu1 %v3259_v9  ;;  %v3686_v6 = vld [vmem:[#allocation9 + $0x84] sm:$0xf]  ;;  %v3104_v9 = vld [vmem:[#allocation9 + $0x68] sm:$0xf0] }
 0x211   : > { %1692 = vmatpush.bf16.msra.mxu0 %v3223_v21  ;;  %v3131_v29 = vor.u32 %v3686_v6, %v3128_v56  ;;  %v3107_v18 = vor.u32 %v3679_v8, %v3104_v9  ;;  %v3072_v21 = vld [vmem:[#allocation9 + $0x28] sm:$0xf0]  ;;  %v3712_v6 = vld [vmem:[#allocation9 + $0x154] sm:$0xf]  ;;  %v3211_v8 = vor.u32 %v3704_v1, %v3208_v3  ;;  %v3215_v9 = vor.u32 %v3709_v7, %v3214_v4  ;;  %v3741_v1 = vld [vmem:[#allocation6 + $0x38] sm:$0xff] }
 0x212   : > { %v3075_v34 = vor.u32 %v3671_v20, %v3072_v21  ;;  %v3240_v56 = vld [vmem:[#allocation9 + $0x170] sm:$0xf0]  ;;  %v3179_v20 = vor.u32 %v3696_v15, %v3176_v17  ;;  %v3757_v3 = vld [vmem:[#allocation6 + $0xb8] sm:$0xff]  ;;  %v3763_v15 = vld [vmem:[#allocation6 + $0xe8] sm:$0xff] }
 0x213   : > { %1722 = vmatpush.bf16.msrb.mxu2 %v3103_v14  ;;  %1735 = vmatpush.bf16.msrb.mxu3 %v3107_v18  ;;  %v3243_v59 = vor.u32 %v3712_v6, %v3240_v56  ;;  %v3700_v14 = vld [vmem:[#allocation9 + $0xec] sm:$0xf0]  ;;  %v3182_v18 = vld [vmem:[#allocation9 + $0xd8] sm:$0xf]  ;;  %v3088_v56 = vld [vmem:[#allocation9 + $0x38] sm:$0xf0] }
 0x214   : > { %1705 = vmatpush.bf16.msrb.mxu1 %v3227_v25  ;;  %v3063_v25 = vor.u32 %v3674_v12, %v3062_v11  ;;  %v3216_v11 = vld [vmem:[#allocation9 + $0x138] sm:$0xf0]  ;;  %v3183_v21 = vor.u32 %v3701_v19, %v3182_v18  ;;  %v3677_v6 = vld [vmem:[#allocation9 + $0x34] sm:$0xf0]  ;;  %v3746_v17 = vld [vmem:[#allocation6 + $0x60] sm:$0xff] }
 0x215   : > { %1693 = vmatpush.bf16.msra.mxu0 %v3191_v37  ;;  %v3307_v37 = vor.u32 %v3728_v24, %v3304_v26  ;;  %v3142_v24 = vld [vmem:[#allocation9 + $0x90] sm:$0xf]  ;;  %v3765_v4 = vld [vmem:[#allocation6 + $0xf8] sm:$0xff]  ;;  %v3754_v18 = vld [vmem:[#allocation6 + $0xa0] sm:$0xff] }
 0x216   : > { %v3692_v26 = vld [vmem:[#allocation9 + $0xac] sm:$0xf0]  ;;  %v3762_v19 = vld [vmem:[#allocation6 + $0xe0] sm:$0xff] }
 0x217   : > { %1723 = vmatpush.bf16.msrb.mxu2 %v3071_v31  ;;  %1736 = vmatpush.bf16.msrb.mxu3 %v3075_v34  ;;  %v3689_v34 = vld [vmem:[#allocation9 + $0x9c] sm:$0xf] }
 0x218   : > { %1706 = vmatpush.bf16.msrb.mxu1 %v3195_v38  ;;  %v3311_v38 = vor.u32 %v3733_v28, %v3310_v27  ;;  %v3688_v27 = vld [vmem:[#allocation9 + $0x94] sm:$0xf] }
 0x219   : > { %1694 = vmatpush.bf16.msra.mxu0 %v3159_v49  ;;  %v3271_v49 = vor.u32 %v3724_v40, %v3270_v39  ;;  %v3144_v28 = vld [vmem:[#allocation9 + $0xb0] sm:$0xf0] }
 0x21a   : > { %v3147_v31 = vor.u32 %v3688_v27, %v3144_v28  ;;  %v3680_v40 = vld [vmem:[#allocation9 + $0x54] sm:$0xf]  ;;  %v3735_v28 = vld [vmem:[#allocation6 + $0x8] sm:$0xff] }
 0x21b   : > { %1768 = vmatpush.bf16.msra.mxu2 %v3311_v38  ;;  %1781 = vmatpush.bf16.msra.mxu3 %v3315_v43  ;;  %v3684_v38 = vld [vmem:[#allocation9 + $0x6c] sm:$0xf0] }
 0x21c   : > { %1707 = vmatpush.bf16.msrb.mxu1 %v3163_v50  ;;  %v3275_v50 = vor.u32 %v3720_v41, %v3272_v44  ;;  %v3112_v41 = vld [vmem:[#allocation9 + $0x70] sm:$0xf0]  ;;  %v3685_v44 = vld [vmem:[#allocation9 + $0x74] sm:$0xf0] }
 0x21d   : > { %1695 = vmatpush.bf16.msra.mxu0 %v3127_v61  ;;  %v3713_v61 = vld [vmem:[#allocation9 + $0x15c] sm:$0xf]  ;;  %v3760_v27 = vld [vmem:[#allocation6 + $0xd0] sm:$0xff] }
 0x21f   : > { %1769 = vmatpush.bf16.msra.mxu2 %v3279_v51  ;;  %v3672_v51 = vld [vmem:[#allocation9 + $0x14] sm:$0xf] }
 0x220   : > { %1708 = vmatpush.bf16.msrb.mxu1 %v3131_v29  ;;  %v3248_v29 = vld [vmem:[#allocation9 + $0x178] sm:$0xf0]  ;;  %v3083_v58 = vor.u32 %v3672_v51, %v3080_v52  ;;  %v3787_v51 = vld [vmem:[#allocation6 + $0x1a8] sm:$0xff] }
 0x221   : > { %1696 = vmatpush.bf16.msra.mxu0 %v3095_v10  ;;  %v3251_v62 = vor.u32 %v3713_v61, %v3248_v29  ;;  %v3705_v10 = vld [vmem:[#allocation9 + $0x11c] sm:$0xf]  ;;  %v3892_v61 = vld [vmem:[%s4637_s22] ss:$0 sm:$0xff] }
 0x222   : > { %v3219_v12 = vor.u32 %v3705_v10, %v3216_v11  ;;  %v3756_v10 = vld [vmem:[#allocation6 + $0xb0] sm:$0xff] }
 0x223   : > { %1770 = vmatpush.bf16.msra.mxu2 %v3247_v60  ;;  %v3764_v11 = vld [vmem:[#allocation6 + $0xf0] sm:$0xff] }
 0x224   : > { %1709 = vmatpush.bf16.msrb.mxu1 %v3099_v13  ;;  %v3174_v13 = vld [vmem:[#allocation9 + $0xd0] sm:$0xf] }
 0x225   : > { %1697 = vmatpush.bf16.msra.mxu0 %v3063_v25  ;;  %v3175_v16 = vor.u32 %v3700_v14, %v3174_v13  ;;  %v3187_v25 = vor.u32 %v3697_v22, %v3184_v23  ;;  %v3747_v13 = vld [vmem:[#allocation6 + $0x68] sm:$0xff]  ;;  %v3753_v22 = vld [vmem:[#allocation6 + $0x98] sm:$0xff] }
 0x226   : > { %v3755_v14 = vld [vmem:[#allocation6 + $0xa8] sm:$0xff]  ;;  %v3761_v23 = vld [vmem:[#allocation6 + $0xd8] sm:$0xff] }
 0x227   : > { %1771 = vmatpush.bf16.msra.mxu2 %v3215_v9  ;;  %v3748_v9 = vld [vmem:[#allocation6 + $0x70] sm:$0xff] }
 0x228   : > { %1710 = vmatpush.bf16.msrb.mxu1 %v3067_v30  ;;  %v3143_v30 = vor.u32 %v3692_v26, %v3142_v24  ;;  %v3736_v24 = vld [vmem:[#allocation6 + $0x10] sm:$0xff] }
 0x229   : > { %1742 = vmatpush.bf16.msrb.mxu0 %v3303_v35  ;;  %v3151_v35 = vor.u32 %v3693_v33, %v3150_v32  ;;  %v3752_v26 = vld [vmem:[#allocation6 + $0x90] sm:$0xff]  ;;  %v3759_v32 = vld [vmem:[#allocation6 + $0xc8] sm:$0xff]  ;;  %v3734_v33 = vld [vmem:[#allocation6] sm:$0xff] }
 0x22b   : > { %1772 = vmatpush.bf16.msra.mxu2 %v3183_v21  ;;  %v3745_v21 = vld [vmem:[#allocation6 + $0x58] sm:$0xff] }
 0x22c   : > { %1755 = vmatpush.bf16.msra.mxu1 %v3307_v37  ;;  %v3110_v37 = vld [vmem:[#allocation9 + $0x50] sm:$0xf] }
 0x22d   : > { %1743 = vmatpush.bf16.msrb.mxu0 %v3271_v49  ;;  %v3111_v43 = vor.u32 %v3684_v38, %v3110_v37  ;;  %v3078_v49 = vld [vmem:[#allocation9 + $0x10] sm:$0xf]  ;;  %v3773_v37 = vld [vmem:[#allocation6 + $0x138] sm:$0xff] }
 0x22e   : > { %v3781_v38 = vld [vmem:[#allocation6 + $0x178] sm:$0xff] }
 0x22f   : > { %1773 = vmatpush.bf16.msra.mxu2 %v3151_v35  ;;  %v3750_v35 = vld [vmem:[#allocation6 + $0x80] sm:$0xff] }
 0x230   : > { %1756 = vmatpush.bf16.msra.mxu1 %v3275_v50  ;;  %v3676_v50 = vld [vmem:[#allocation9 + $0x2c] sm:$0xf0] }
 0x231   : > { %1744 = vmatpush.bf16.msrb.mxu0 %v3239_v5  ;;  %v3673_v5 = vld [vmem:[#allocation9 + $0x1c] sm:$0xf]  ;;  %v3079_v57 = vor.u32 %v3676_v50, %v3078_v49  ;;  %v3771_v49 = vld [vmem:[#allocation6 + $0x128] sm:$0xff] }
 0x232   : > { %v3091_v60 = vor.u32 %v3673_v5, %v3088_v56  ;;  %v3779_v50 = vld [vmem:[#allocation6 + $0x168] sm:$0xff]  ;;  %v3770_v5 = vld [vmem:[#allocation6 + $0x120] sm:$0xff] }
 0x233   : > { %v3778_v56 = vld [vmem:[#allocation6 + $0x160] sm:$0xff] }
 0x234   : > { %1757 = vmatpush.bf16.msra.mxu1 %v3243_v59  ;;  %v3087_v59 = vor.u32 %v3677_v6, %v3086_v53 }
 0x235   : > { %1745 = vmatpush.bf16.msrb.mxu0 %v3207_v2  ;;  %v3749_v2 = vld [vmem:[#allocation6 + $0x78] sm:$0xff] }
 0x238   : > { %1758 = vmatpush.bf16.msra.mxu1 %v3211_v8  ;;  %v3740_v8 = vld [vmem:[#allocation6 + $0x30] sm:$0xff] }
 0x239   : > { %1746 = vmatpush.bf16.msrb.mxu0 %v3175_v16  ;;  %v3738_v16 = vld [vmem:[#allocation6 + $0x20] sm:$0xff] }
 0x23c   : > { %1759 = vmatpush.bf16.msra.mxu1 %v3179_v20  ;;  %v3737_v20 = vld [vmem:[#allocation6 + $0x18] sm:$0xff] }
 0x23d   : > { %1747 = vmatpush.bf16.msrb.mxu0 %v3143_v30  ;;  %v3743_v30 = vld [vmem:[#allocation6 + $0x48] sm:$0xff] }
 0x240   : > { %1760 = vmatpush.bf16.msra.mxu1 %v3147_v31  ;;  %v3751_v31 = vld [vmem:[#allocation6 + $0x88] sm:$0xff] }
 0x241   : > { %1748 = vmatpush.bf16.msrb.mxu0 %v3111_v43  ;;  %v3788_v43 = vld [vmem:[#allocation6 + $0x1b0] sm:$0xff] }
 0x245   : > { %1749 = vmatpush.bf16.msrb.mxu0 %v3079_v57  ;;  %v3786_v57 = vld [vmem:[#allocation6 + $0x1a0] sm:$0xff] }
 0x262   : > { %v2759_v36 = vpop.permute.xlu2 %2758 }
 0x263   : > { %v2761_v42 = vsel %vm899_vm2, %v4452_v55, %v2759_v36  ;;  %v3283_v55 = vor.u32 %v3721_v47, %v3280_v48  ;;  %v3152_v36 = vld [vmem:[#allocation9 + $0xb8] sm:$0xf0]  ;;  %v3115_v47 = vor.u32 %v3680_v40, %v3112_v41  ;;  %v3772_v41 = vld [vmem:[#allocation6 + $0x130] sm:$0xff] }
 0x264   : > { %2763 = vst.msk [vmem:[%s4321_s18] sm:$0x3] %vm2762_vm9, %v2761_v42  ;;  %v3155_v39 = vor.u32 %v3689_v34, %v3152_v36  ;;  %v3118_v42 = vld [vmem:[#allocation9 + $0x58] sm:$0xf]  ;;  %v3742_v34 = vld [vmem:[#allocation6 + $0x40] sm:$0xff] }
 0x265   : > { %1782 = vmatpush.bf16.msra.mxu3 %v3283_v55  ;;  %v3119_v48 = vor.u32 %v3685_v44, %v3118_v42  ;;  %v3123_v55 = vor.u32 %v3681_v45, %v3120_v46  ;;  %1761 = vmatpush.bf16.msra.mxu1 %v3115_v47  ;;  %v3758_v36 = vld [vmem:[#allocation6 + $0xc0] sm:$0xff]  ;;  %v3797_v40 = vld [vmem:[#allocation6 + $0x1f8] sm:$0xff]  ;;  %v3780_v42 = vld [vmem:[#allocation6 + $0x170] sm:$0xff] }
 0x266   : > { %v4469_v44 = vld [vmem:[%s4639_s24] sm:$0xff] }
 0x267   : > { %1774 = vmatpush.bf16.msra.mxu2 %v3119_v48  ;;  %v3796_v45 = vld [vmem:[#allocation6 + $0x1f0] sm:$0xff]  ;;  %v1355_v47 = vperm.slane %v4469_v44, 1  ;;  %v1356_v53 = vperm.slane %v4469_v44, 2  ;;  %v1357_v6 = vperm.slane %v4469_v44, 3 }
 0x269   : > { %1783 = vmatpush.bf16.msra.mxu3 %v3251_v62  ;;  %1762 = vmatpush.bf16.msra.mxu1 %v3083_v58  ;;  %v3794_v58 = vld [vmem:[#allocation6 + $0x1e0] sm:$0xff] }
 0x26b   : > { %1775 = vmatpush.bf16.msra.mxu2 %v3087_v59  ;;  %v1354_v59 = vperm.slane %v4469_v44, 0 }
 0x26d   : > { %1784 = vmatpush.bf16.msra.mxu3 %v3219_v12  ;;  %v3739_v12 = vld [vmem:[#allocation6 + $0x28] sm:$0xff] }
 0x271   : > { %1785 = vmatpush.bf16.msra.mxu3 %v3187_v25  ;;  %v3744_v25 = vld [vmem:[#allocation6 + $0x50] sm:$0xff] }
 0x275   : > { %1786 = vmatpush.bf16.msra.mxu3 %v3155_v39  ;;  %v3789_v39 = vld [vmem:[#allocation6 + $0x1b8] sm:$0xff] }
 0x279   : > { %1787 = vmatpush.bf16.msra.mxu3 %v3123_v55  ;;  %v3795_v55 = vld [vmem:[#allocation6 + $0x1e8] sm:$0xff] }
 0x27d   : > { %1788 = vmatpush.bf16.msra.mxu3 %v3091_v60 }
 0x28d   : > { %v1282_v29 = vpop.f32.mrf.mxu0 }
 0x28e   : > { %v1283_v62 = vadd.f32 %v3892_v61, %v1282_v29 }
 0x290   : > { %v1286_v63 = vmax.f32 %v1283_v62, 0.0 }
 0x292   : > { %v1287_v0 = vpack.c.bf16 %v1286_v63, %v1286_v63 }
 0x294   : > { %1698 = vmatmul.bf16.vlgmr.msra.gmra.mxu0 %v1287_v0  ;;  %1711 = vmatmul.bf16.vlgmr.msrb.gmra.mxu1 %v1287_v0 }
 0x295   : > { %1724 = vmatmul.bf16.vlgmr.msrb.gmra.mxu2 %v1287_v0  ;;  %1737 = vmatmul.bf16.vlgmr.msrb.gmra.mxu3 %v1287_v0  ;;  %v1284_v7 = vpop.f32.mrf.mxu0 }
 0x296   : > { %2418 = vmatpush.bf16.msra.mxu0 %v3741_v1  ;;  %2431 = vmatpush.bf16.msrb.mxu1 %v3749_v2  ;;  %v3769_v7 = vld [vmem:[#allocation6 + $0x118] sm:$0xff] }
 0x297   : > { %2444 = vmatpush.bf16.msrb.mxu2 %v3757_v3  ;;  %2457 = vmatpush.bf16.msrb.mxu3 %v3765_v4 }
 0x29a   : > { %2419 = vmatpush.bf16.msra.mxu0 %v3740_v8  ;;  %2432 = vmatpush.bf16.msrb.mxu1 %v3748_v9  ;;  %v3777_v8 = vld [vmem:[#allocation6 + $0x158] sm:$0xff] }
 0x29b   : > { %2445 = vmatpush.bf16.msrb.mxu2 %v3756_v10  ;;  %2458 = vmatpush.bf16.msrb.mxu3 %v3764_v11  ;;  %v3785_v9 = vld [vmem:[#allocation6 + $0x198] sm:$0xff] }
 0x29c   : > { %v4476_v10 = vld [vmem:[%s4310_s9] sm:$0xff] }
 0x29d   : > { %v3793_v11 = vld [vmem:[#allocation6 + $0x1d8] sm:$0xff] }
 0x29e   : > { %2420 = vmatpush.bf16.msra.mxu0 %v3739_v12  ;;  %2433 = vmatpush.bf16.msrb.mxu1 %v3747_v13 }
 0x29f   : > { %2446 = vmatpush.bf16.msrb.mxu2 %v3755_v14  ;;  %2459 = vmatpush.bf16.msrb.mxu3 %v3763_v15  ;;  %v3768_v14 = vld [vmem:[#allocation6 + $0x110] sm:$0xff] }
 0x2a0   : > { %v3776_v15 = vld [vmem:[#allocation6 + $0x150] sm:$0xff] }
 0x2a2   : > { %2421 = vmatpush.bf16.msra.mxu0 %v3738_v16  ;;  %2434 = vmatpush.bf16.msrb.mxu1 %v3746_v17  ;;  %v3784_v17 = vld [vmem:[#allocation6 + $0x190] sm:$0xff] }
 0x2a3   : > { %2447 = vmatpush.bf16.msrb.mxu2 %v3754_v18  ;;  %2460 = vmatpush.bf16.msrb.mxu3 %v3762_v19  ;;  %v3792_v18 = vld [vmem:[#allocation6 + $0x1d0] sm:$0xff] }
 0x2a4   : > { %1750 = vmatmul.bf16.vlgmr.msrb.gmra.mxu0 %v1287_v0  ;;  %1763 = vmatmul.bf16.vlgmr.msra.gmra.mxu1 %v1287_v0 }
 0x2a5   : > { %1776 = vmatmul.bf16.vlgmr.msra.gmra.mxu2 %v1287_v0  ;;  %1789 = vmatmul.bf16.vlgmr.msra.gmra.mxu3 %v1287_v0 }
 0x2a6   : > { %2422 = vmatpush.bf16.msra.mxu0 %v3737_v20  ;;  %2435 = vmatpush.bf16.msrb.mxu1 %v3745_v21 }
 0x2a7   : > { %2448 = vmatpush.bf16.msrb.mxu2 %v3753_v22  ;;  %2461 = vmatpush.bf16.msrb.mxu3 %v3761_v23 }
 0x2aa   : > { %2423 = vmatpush.bf16.msra.mxu0 %v3736_v24  ;;  %2436 = vmatpush.bf16.msrb.mxu1 %v3744_v25  ;;  %v1359_v24 = vperm.slane %v4469_v44, 5 }
 0x2ab   : > { %2449 = vmatpush.bf16.msrb.mxu2 %v3752_v26  ;;  %2462 = vmatpush.bf16.msrb.mxu3 %v3760_v27  ;;  %v3767_v26 = vld [vmem:[#allocation6 + $0x108] sm:$0xff] }
 0x2ac   : > { %v3775_v27 = vld [vmem:[#allocation6 + $0x148] sm:$0xff] }
 0x2ae   : > { %2424 = vmatpush.bf16.msra.mxu0 %v3735_v28  ;;  %2437 = vmatpush.bf16.msrb.mxu1 %v3743_v30  ;;  %v3783_v28 = vld [vmem:[#allocation6 + $0x188] sm:$0xff] }
 0x2af   : > { %2450 = vmatpush.bf16.msrb.mxu2 %v3751_v31  ;;  %2463 = vmatpush.bf16.msrb.mxu3 %v3759_v32  ;;  %v3791_v30 = vld [vmem:[#allocation6 + $0x1c8] sm:$0xff] }
 0x2b2   : > { %2425 = vmatpush.bf16.msra.mxu0 %v3734_v33  ;;  %2438 = vmatpush.bf16.msrb.mxu1 %v3742_v34  ;;  %v1360_v34 = vperm.slane %v4469_v44, 6 }
 0x2b3   : > { %2451 = vmatpush.bf16.msrb.mxu2 %v3750_v35  ;;  %2464 = vmatpush.bf16.msrb.mxu3 %v3758_v36  ;;  %v1361_v35 = vperm.slane %v4469_v44, 7  ;;  %v3766_v36 = vld [vmem:[#allocation6 + $0x100] sm:$0xff] }
 0x2b6   : > { %2470 = vmatpush.bf16.msrb.mxu0 %v3773_v37  ;;  %2483 = vmatpush.bf16.msra.mxu1 %v3781_v38  ;;  %v3774_v37 = vld [vmem:[#allocation6 + $0x140] sm:$0xff] }
 0x2b7   : > { %2496 = vmatpush.bf16.msra.mxu2 %v3789_v39  ;;  %2509 = vmatpush.bf16.msra.mxu3 %v3797_v40  ;;  %v3782_v38 = vld [vmem:[#allocation6 + $0x180] sm:$0xff]  ;;  %v1358_v40 = vperm.slane %v4469_v44, 4 }
 0x2b8   : > { %v3790_v39 = vld [vmem:[#allocation6 + $0x1c0] sm:$0xff] }
 0x2ba   : > { %2471 = vmatpush.bf16.msrb.mxu0 %v3772_v41  ;;  %2484 = vmatpush.bf16.msra.mxu1 %v3780_v42 }
 0x2bb   : > { %2497 = vmatpush.bf16.msra.mxu2 %v3788_v43  ;;  %2510 = vmatpush.bf16.msra.mxu3 %v3796_v45 }
 0x2be   : > { %2472 = vmatpush.bf16.msrb.mxu0 %v3771_v49  ;;  %2485 = vmatpush.bf16.msra.mxu1 %v3779_v50 }
 0x2bf   : > { %2498 = vmatpush.bf16.msra.mxu2 %v3787_v51  ;;  %2511 = vmatpush.bf16.msra.mxu3 %v3795_v55  ;;  %v890_v55 = vld [vmem:[%s4310_s9 + $0x8] sm:$0xff]  ;;  %s4704_s9 = sld [smem:[#allocation40_spill]] }
 0x2c2   : > { %2473 = vmatpush.bf16.msrb.mxu0 %v3770_v5  ;;  %2486 = vmatpush.bf16.msra.mxu1 %v3778_v56 }
 0x2c3   : > { %2499 = vmatpush.bf16.msra.mxu2 %v3786_v57  ;;  %2512 = vmatpush.bf16.msra.mxu3 %v3794_v58 }
 0x2c6   : > { %2474 = vmatpush.bf16.msrb.mxu0 %v3769_v7  ;;  %2487 = vmatpush.bf16.msra.mxu1 %v3777_v8 }
 0x2c7   : > { %2500 = vmatpush.bf16.msra.mxu2 %v3785_v9  ;;  %2513 = vmatpush.bf16.msra.mxu3 %v3793_v11 }
 0x2ca   : > { %2475 = vmatpush.bf16.msrb.mxu0 %v3768_v14  ;;  %2488 = vmatpush.bf16.msra.mxu1 %v3776_v15 }
 0x2cb   : > { %2501 = vmatpush.bf16.msra.mxu2 %v3784_v17  ;;  %2514 = vmatpush.bf16.msra.mxu3 %v3792_v18 }
 0x2ce   : > { %2476 = vmatpush.bf16.msrb.mxu0 %v3767_v26  ;;  %2489 = vmatpush.bf16.msra.mxu1 %v3775_v27 }
 0x2cf   : > { %2502 = vmatpush.bf16.msra.mxu2 %v3783_v28  ;;  %2515 = vmatpush.bf16.msra.mxu3 %v3791_v30 }
 0x2d2   : > { %2477 = vmatpush.bf16.msrb.mxu0 %v3766_v36  ;;  %2490 = vmatpush.bf16.msra.mxu1 %v3774_v37  ;;  %v3805_v37 = vld [vmem:[%s4632_s17 + $0x38] sm:$0xff] }
 0x2d3   : > { %2503 = vmatpush.bf16.msra.mxu2 %v3782_v38  ;;  %2516 = vmatpush.bf16.msra.mxu3 %v3790_v39  ;;  %v3813_v38 = vld [vmem:[%s4634_s19 + $0x38] sm:$0xff]  ;;  %v3804_v39 = vld [vmem:[%s4632_s17 + $0x30] sm:$0xff] }
 0x311   : > { %v1699_v46 = vpop.f32.mrf.mxu0  ;;  %v1712_v48 = vpop.f32.mrf.mxu1 }
 0x312   : > { %v1713_v52 = vadd.f32 %v1712_v48, %v1355_v47  ;;  %v1700_v2 = vadd.f32 %v1699_v46, %v1354_v59 }
 0x314   : > { %v1802_v29 = vrot.slane %v1713_v52, 6 }
 0x316   : > { %v1809_v12 = vsel %vm1808_vm10, %v1700_v2, %v1802_v29 }
 0x318   : > { %v1725_v60 = vpop.f32.mrf.mxu2  ;;  %v1738_v61 = vpop.f32.mrf.mxu3 }
 0x319   : > { %v1726_v62 = vadd.f32 %v1725_v60, %v1356_v53  ;;  %v1739_v63 = vadd.f32 %v1738_v61, %v1357_v6  ;;  %v1701_v0 = vpop.f32.mrf.mxu0  ;;  %v1714_v1 = vpop.f32.mrf.mxu1 }
 0x31b   : > { %v1803_v3 = vrot.slane %v1726_v62, 4  ;;  %v1804_v4 = vrot.slane %v1739_v63, 2 }
 0x31d   : > { %v1811_v13 = vsel %vm1810_vm11, %v1803_v3, %v1804_v4 }
 0x31e   : > { %v1813_v16 = vsel %vm1812_vm12, %v1809_v12, %v1811_v13 }
 0x31f   : > { %v1819_v19 = vsub.f32 %v4476_v10, %v1813_v16 }
 0x320   : > { %v1727_v20 = vpop.f32.mrf.mxu2  ;;  %v1740_v21 = vpop.f32.mrf.mxu3 }
 0x321   : > { %v1821_v22 = vmul.f32 %v1819_v19, %v1819_v19  ;;  %v1751_v23 = vpop.f32.mrf.mxu0  ;;  %v1764_v25 = vpop.f32.mrf.mxu1 }
 0x322   : > { %v1765_v33 = vadd.f32 %v1764_v25, %v1359_v24  ;;  %v1752_v49 = vadd.f32 %v1751_v23, %v1358_v40  ;;  %v3812_v40 = vld [vmem:[%s4634_s19 + $0x30] sm:$0xff] }
 0x323   : > { %v1823_v31 = vadd.f32 1.837877, %v1821_v22 }
 0x324   : > { %v1805_v43 = vrot.slane %v1765_v33, 6 }
 0x325   : > { %v1825_v32 = vmul.f32 -0.5, %v1823_v31 }
 0x326   : > { %v1814_v52 = vsel %vm1808_vm10, %v1752_v49, %v1805_v43  ;;  %v3802_v43 = vld [vmem:[%s4632_s17 + $0x20] sm:$0xff]  ;;  %v3808_v49 = vld [vmem:[%s4634_s19 + $0x10] sm:$0xff] }
 0x327   : > { %1829 = vst [vmem:[#allocation1] ss:$4 sm:$0xff] %v1825_v32 }
 0x328   : > { %v1777_v41 = vpop.f32.mrf.mxu2  ;;  %v1790_v42 = vpop.f32.mrf.mxu3 }
 0x329   : > { %v1778_v45 = vadd.f32 %v1777_v41, %v1360_v34  ;;  %v1791_v46 = vadd.f32 %v1790_v42, %v1361_v35  ;;  %v1753_v47 = vpop.f32.mrf.mxu0  ;;  %v1766_v48 = vpop.f32.mrf.mxu1  ;;  %v3803_v41 = vld [vmem:[%s4632_s17 + $0x28] sm:$0xff] }
 0x32a   : > { %v3811_v42 = vld [vmem:[%s4634_s19 + $0x28] sm:$0xff]  ;;  %v3809_v47 = vld [vmem:[%s4634_s19 + $0x18] sm:$0xff]  ;;  %v3800_v48 = vld [vmem:[%s4632_s17 + $0x10] sm:$0xff] }
 0x32b   : > { %v1806_v50 = vrot.slane %v1778_v45, 4  ;;  %v1807_v51 = vrot.slane %v1791_v46, 2  ;;  %v3810_v45 = vld [vmem:[%s4634_s19 + $0x20] sm:$0xff]  ;;  %v3801_v46 = vld [vmem:[%s4632_s17 + $0x18] sm:$0xff] }
 0x32d   : > { %v1815_v53 = vsel %vm1810_vm11, %v1806_v50, %v1807_v51  ;;  %v3799_v50 = vld [vmem:[%s4632_s17 + $0x8] sm:$0xff] }
 0x32e   : > { %v1832_v44 = vld.sshfl [vmem:[#allocation1] sm:$0xff pattern:$0x73625140]  ;;  %v1833_v6 = vld.sshfl [vmem:[#allocation1 + $0x8] sm:$0xff pattern:$0x73625140]  ;;  %v1816_v5 = vsel %vm1812_vm12, %v1814_v52, %v1815_v53 }
 0x32f   : > { %v1834_v56 = vld.sshfl [vmem:[#allocation1 + $0x10] sm:$0xff pattern:$0x73625140]  ;;  %v1835_v57 = vld.sshfl [vmem:[#allocation1 + $0x18] sm:$0xff pattern:$0x73625140]  ;;  %v1820_v58 = vsub.f32 %v890_v55, %v1816_v5 }
 0x330   : > { %1875 = vst [vmem:[#allocation1] ss:$4 sm:$0xff] %v4476_v10  ;;  %v1779_v59 = vpop.f32.mrf.mxu2  ;;  %v1792_v60 = vpop.f32.mrf.mxu3  ;;  %v1848_v62 = vsel %vm1808_vm10, %v1832_v44, 0.0  ;;  %v1849_v63 = vsel %vm1808_vm10, %v1833_v6, 0.0  ;;  %v1851_v12 = vsel %vm1808_vm10, %v1834_v56, 0.0  ;;  %v1853_v14 = vsel %vm1808_vm10, %v1835_v57, 0.0 }
 0x331   : > { %v1822_v61 = vmul.f32 %v1820_v58, %v1820_v58  ;;  %v1850_v2 = vadd.f32 %v1849_v63, %v1848_v62  ;;  %v3807_v51 = vld [vmem:[%s4634_s19 + $0x8] sm:$0xff]  ;;  %v3806_v52 = vld [vmem:[%s4634_s19] sm:$0xff] }
 0x332   : > { %v3893_v53 = vld [vmem:[%s4631_s16] ss:$0 sm:$0xff] }
 0x333   : > { %v1824_v29 = vadd.f32 1.837877, %v1822_v61  ;;  %v1852_v13 = vadd.f32 %v1851_v12, %v1850_v2 }
 0x335   : > { %v1826_v0 = vmul.f32 -0.5, %v1824_v29  ;;  %v1854_v19 = vadd.f32 %v1853_v14, %v1852_v13 }
 0x337   : > { %1831 = vst [vmem:[#allocation1 + $0x20] ss:$4 sm:$0xff] %v1826_v0  ;;  %v1878_v1 = vld.sshfl [vmem:[#allocation1] sm:$0xff pattern:$0x73625140] }
 0x338   : > { %v1894_v3 = vpack.c.bf16 %v1878_v1, %v1878_v1  ;;  %v1879_v4 = vld.sshfl [vmem:[#allocation1 + $0x8] sm:$0xff pattern:$0x73625140]  ;;  %v1880_v7 = vld.sshfl [vmem:[#allocation1 + $0x10] sm:$0xff pattern:$0x73625140] }
 0x339   : > { %v1895_v8 = vpack.c.bf16 %v1879_v4, %v1879_v4  ;;  %v1896_v9 = vpack.c.bf16 %v1880_v7, %v1880_v7  ;;  %v1881_v11 = vld.sshfl [vmem:[#allocation1 + $0x18] sm:$0xff pattern:$0x73625140] }
 0x33a   : > { %2426 = vmatmul.bf16.vlgmr.msra.gmra.mxu0 %v1894_v3  ;;  %v1897_v10 = vpack.c.bf16 %v1881_v11, %v1881_v11 }
 0x33b   : > { %2439 = vmatmul.bf16.vlgmr.msrb.gmra.mxu1 %v1895_v8  ;;  %2452 = vmatmul.bf16.vlgmr.msrb.gmra.mxu2 %v1896_v9 }
 0x33c   : > { %2465 = vmatmul.bf16.vlgmr.msrb.gmra.mxu3 %v1897_v10  ;;  %2592 = vmatpush.bf16.msra.mxu0 %v3805_v37  ;;  %v3894_v37 = vld [vmem:[%s4704_s9] ss:$0 sm:$0xff]  ;;  %s3991_s9 = sshra.s32 %s2799_s7, 4  ;;  %s3992_s9 = int_to_ptr.hbm [resolvable:$true] %s3991_s9 }
 0x33d   : > { %2673 = vmatpush.bf16.msrb.mxu1 %v3813_v38  ;;  %s3993_s27 = scalar_lea.hbm %s3992_s9, 2  ;;  %p3998_p4 = scmp.lt.s32.totalorder %s3992_s9, %s4707_s10 }
 0x33e   : > { %v1836_v15 = vld.sshfl [vmem:[#allocation1 + $0x20] sm:$0xff pattern:$0x73625140]  ;;  %v1837_v16 = vld.sshfl [vmem:[#allocation1 + $0x28] sm:$0xff pattern:$0x73625140]  ;;  %p3994_p1 = scmp.ne.s32.totalorder %s3992_s9, %s3993_s27  ;;  %p3999_p7 = scmp.lt.s32.totalorder %s3997_s1, %s3993_s27 }
 0x33f   : > { %v1838_v17 = vld.sshfl [vmem:[#allocation1 + $0x30] sm:$0xff pattern:$0x73625140]  ;;  %v1839_v18 = vld.sshfl [vmem:[#allocation1 + $0x38] sm:$0xff pattern:$0x73625140] }
 0x340   : > { %v1855_v20 = vsel %vm1808_vm10, %v1836_v15, 0.0  ;;  %1877 = vst [vmem:[#allocation1 + $0x20] ss:$4 sm:$0xff] %v890_v55  ;;  %v1857_v22 = vsel %vm1808_vm10, %v1837_v16, 0.0  ;;  %v1859_v24 = vsel %vm1808_vm10, %v1838_v17, 0.0  ;;  %v1861_v26 = vsel %vm1808_vm10, %v1839_v18, 0.0  ;;  %2593 = vmatpush.bf16.msra.mxu0 %v3804_v39  ;;  %p3995_p2 = pnand %p3994_p1, %p4265_p5  ;;  %p4000_p8 = por %p3999_p7, %p3998_p4 }
 0x341   : > { %v1856_v21 = vadd.f32 %v1855_v20, %v1854_v19  ;;  %2674 = vmatpush.bf16.msrb.mxu1 %v3812_v40  ;;  %v3798_v55 = vld [vmem:[%s4632_s17] sm:$0xff]  ;;  %v1251_v16 = vld [vmem:[#allocation4] sm:$0x1] }
 0x342   : > { %v3895_v17 = vld [vmem:[%s4703_s20] ss:$0 sm:$0xff]  ;;  %v2705_v18 = vmul.f32 %v1251_v16, %v1251_v16  ;;  %s2796_s20 = sshll.u32 %s4321_s18, 4  ;;  %p3996_p3 = pneg %p3995_p2  ;;  %s2797_s20 = int_to_ptr.vmem [resolvable:$true] %s2796_s20 }
 0x343   : > { %v1858_v23 = vadd.f32 %v1857_v22, %v1856_v21 }
 0x344   : > { %2594 = vmatpush.bf16.msra.mxu0 %v3803_v41  ;;  %v2714_v22 = vmul.f32 2.0, %v2705_v18  ;;  %p4001_p9 = pnand %p4000_p8, %p3996_p3 }
 0x345   : > { %v1860_v25 = vadd.f32 %v1859_v24, %v1858_v23  ;;  %2675 = vmatpush.bf16.msrb.mxu1 %v3811_v42 }
 0x347   : > { %v1862_v27 = vadd.f32 %v1861_v26, %v1860_v25  ;;  %v1882_v28 = vld.sshfl [vmem:[#allocation1 + $0x20] sm:$0xff pattern:$0x73625140]  ;;  %v1883_v30 = vld.sshfl [vmem:[#allocation1 + $0x28] sm:$0xff pattern:$0x73625140] }
 0x348   : > { %v1898_v31 = vpack.c.bf16 %v1882_v28, %v1882_v28  ;;  %v1899_v32 = vpack.c.bf16 %v1883_v30, %v1883_v30  ;;  %v1884_v33 = vld.sshfl [vmem:[#allocation1 + $0x30] sm:$0xff pattern:$0x73625140]  ;;  %v1885_v34 = vld.sshfl [vmem:[#allocation1 + $0x38] sm:$0xff pattern:$0x73625140]  ;;  %2595 = vmatpush.bf16.msra.mxu0 %v3802_v43 }
 0x349   : > { %1863 = vadd.xlane.f32.xlu1 %v1862_v27  ;;  %v1900_v35 = vpack.c.bf16 %v1884_v33, %v1884_v33  ;;  %v1901_v36 = vpack.c.bf16 %v1885_v34, %v1885_v34  ;;  %2676 = vmatpush.bf16.msrb.mxu1 %v3810_v45  ;;  %v2716_v25 = vperm.slane %v2714_v22, 0 }
 0x34a   : > { %2478 = vmatmul.bf16.vlgmr.msrb.gmra.mxu0 %v1898_v31 }
 0x34b   : > { %2491 = vmatmul.bf16.vlgmr.msra.gmra.mxu1 %v1899_v32  ;;  %2504 = vmatmul.bf16.vlgmr.msra.gmra.mxu2 %v1900_v35  ;;  %vm2723_vm14 = vweird.f32 %v2716_v25 }
 0x34c   : > { %2517 = vmatmul.bf16.vlgmr.msra.gmra.mxu3 %v1901_v36  ;;  %2596 = vmatpush.bf16.msra.mxu0 %v3801_v46 }
 0x34d   : > { %2677 = vmatpush.bf16.msrb.mxu1 %v3809_v47 }
 0x350   : > { %2597 = vmatpush.bf16.msra.mxu0 %v3800_v48 }
 0x351   : > { %2678 = vmatpush.bf16.msrb.mxu1 %v3808_v49  ;;  %v2729_v49 = vand.u32 2147483648, %v2716_v25 }
 0x354   : > { %2598 = vmatpush.bf16.msra.mxu0 %v3799_v50 }
 0x355   : > { %2679 = vmatpush.bf16.msrb.mxu1 %v3807_v51 }
 0x358   : > { %2599 = vmatpush.bf16.msra.mxu0 %v3798_v55  ;;  %v2727_v55 = vand.u32 2147483647, %v2716_v25 }
 0x359   : > { %2680 = vmatpush.bf16.msrb.mxu1 %v3806_v52 }
 0x35a   : > { %vm2728_vm1 = vcmp.eq.f32.partialorder %v2727_v55, 8.507059e+37 }
 0x3b7   : > { %v2427_v44 = vpop.f32.mrf.mxu0 }
 0x3b8   : > { %v2440_v6 = vpop.f32.mrf.mxu1  ;;  %v2428_v5 = vadd.f32 %v3893_v53, %v2427_v44  ;;  %v2730_v53 = vor.u32 1.1754944e-38, %v2729_v49 }
 0x3ba   : > { %v2441_v57 = vadd.f32 %v2440_v6, %v2428_v5  ;;  %v3896_v5 = vld [vmem:[%s4629_s14] ss:$0 sm:$0xff] }
 0x3be   : > { %v2453_v56 = vpop.f32.mrf.mxu2 }
 0x3bf   : > { %v2466_v58 = vpop.f32.mrf.mxu3  ;;  %v2429_v59 = vpop.f32.mrf.mxu0  ;;  %v2454_v61 = vadd.f32 %v2453_v56, %v2441_v57 }
 0x3c0   : > { %v2442_v60 = vpop.f32.mrf.mxu1 }
 0x3c1   : > { %v2467_v62 = vadd.f32 %v2466_v58, %v2454_v61 }
 0x3c6   : > { %v2455_v29 = vpop.f32.mrf.mxu2 }
 0x3c7   : > { %v2468_v63 = vpop.f32.mrf.mxu3  ;;  %v2479_v0 = vpop.f32.mrf.mxu0 }
 0x3c8   : > { %v2492_v1 = vpop.f32.mrf.mxu1  ;;  %v2480_v2 = vadd.f32 %v2479_v0, %v2467_v62 }
 0x3ca   : > { %v2493_v3 = vadd.f32 %v2492_v1, %v2480_v2 }
 0x3ce   : > { %v2505_v4 = vpop.f32.mrf.mxu2 }
 0x3cf   : > { %v2506_v7 = vadd.f32 %v2505_v4, %v2493_v3  ;;  %v2518_v8 = vpop.f32.mrf.mxu3  ;;  %v2481_v9 = vpop.f32.mrf.mxu0 }
 0x3d0   : > { %v2494_v11 = vpop.f32.mrf.mxu1 }
 0x3d1   : > { %v2519_v10 = vadd.f32 %v2518_v8, %v2506_v7 }
 0x3d3   : > { %v2522_v12 = vmax.f32 %v2519_v10, 0.0 }
 0x3d5   : > { %v2523_v13 = vpack.c.bf16 %v2522_v12, %v2522_v12 }
 0x3d6   : > { %v2507_v14 = vpop.f32.mrf.mxu2 }
 0x3d7   : > { %v2520_v15 = vpop.f32.mrf.mxu3  ;;  %2600 = vmatmul.bf16.vlgmr.msra.gmra.mxu0 %v2523_v13  ;;  %2681 = vmatmul.bf16.vlgmr.msrb.gmra.mxu1 %v2523_v13 }
 0x454   : > { %v2601_v19 = vpop.f32.mrf.mxu0  ;;  %v2682_v20 = vpop.f32.mrf.mxu1 }
 0x455   : > { %v2683_v21 = vadd.f32 %v3895_v17, %v2682_v20  ;;  %v2602_v43 = vadd.f32 %v3894_v37, %v2601_v19 }
 0x457   : > { %v2687_v23 = vand.u32 2147483647, %v2683_v21  ;;  %v2686_v42 = vmax.f32 %v2683_v21, 0.0  ;;  %v2711_v50 = vsub.f32 %v2602_v43, %v4449_v54 }
 0x459   : > { %v2688_v24 = vsub.f32 0.0, %v2687_v23  ;;  %v2712_v44 = vmul.f32 %v2711_v50, %v2711_v50 }
 0x45b   : > { %v2689_v26 = vmul.f32 1.442695, %v2688_v24 }
 0x45c   : > { %v2603_v27 = vpop.f32.mrf.mxu0  ;;  %v2684_v28 = vpop.f32.mrf.mxu1 }
 0x45d   : > { %3909 = vpow2.f32 %v2689_v26 }
 0x45e   : > { %3911 = vrcp.f32 %v2716_v25 }
 0x463   : > { %v3910_v30 = vpop.eup %3909 }
 0x464   : > { %v3912_v31 = vpop.eup %3911  ;;  %v2691_v32 = vadd.f32 1.0, %v3910_v30  ;;  %v2694_v33 = vmul.f32 -0.5, %v3910_v30  ;;  %v2697_v36 = vand.u32 2147483647, %v3910_v30 }
 0x465   : > { %v2719_v34 = vmul.f32 %v3912_v31, %v2716_v25  ;;  %vm2724_vm15 = vweird.f32 %v3912_v31 }
 0x466   : > { %3913 = vlog2.f32 %v2691_v32  ;;  %v2695_v35 = vadd.f32 1.0, %v2694_v33  ;;  %vm2698_vm13 = vcmp.lt.f32.partialorder %v2697_v36, 0.0004427343  ;;  %vm2725_vm0 = vmor %vm2723_vm14, %vm2724_vm15 }
 0x467   : > { %v2720_v38 = vsub.f32 1.0, %v2719_v34 }
 0x468   : > { %v2696_v41 = vmul.f32 %v3910_v30, %v2695_v35 }
 0x469   : > { %v2721_v46 = vmul.f32 %v3912_v31, %v2720_v38 }
 0x46b   : > { %v2722_v51 = vadd.f32 %v3912_v31, %v2721_v46 }
 0x46c   : > { %v3914_v39 = vpop.eup %3913 }
 0x46d   : > { %v2693_v40 = vmul.f32 0.6931472, %v3914_v39  ;;  %v2726_v6 = vsel %vm2725_vm0, %v3912_v31, %v2722_v51 }
 0x46e   : > { %v2731_v58 = vsel %vm2728_vm1, %v2730_v53, %v2726_v6 }
 0x46f   : > { %v2699_v45 = vsel %vm2698_vm13, %v2696_v41, %v2693_v40 }
 0x470   : > { %v2700_v47 = vadd.f32 %v2699_v45, %v2686_v42 }
 0x472   : > { %v2701_v48 = vadd.f32 1e-06, %v2700_v47 }
 0x474   : > { %3915 = vlog2.f32 %v2701_v48  ;;  %v2706_v52 = vmul.f32 %v2701_v48, %v2701_v48 }
 0x476   : > { %v2713_v56 = vadd.f32 %v2712_v44, %v2706_v52 }
 0x478   : > { %v2732_v60 = vmul.f32 %v2731_v58, %v2713_v56 }
 0x47a   : > { %v3916_v57 = vpop.eup %3915 }
 0x47b   : > { %v2703_v54 = vmul.f32 0.6931472, %v3916_v57 }
 0x47d   : > { %v2710_v59 = vsub.f32 %v3896_v5, %v2703_v54 }
 0x47f   : > { %v2733_v61 = vadd.f32 %v2732_v60, %v2710_v59 }
 0x481   : > { %v3636_v29 = vadd.f32 -0.5, %v2733_v61 }
 0x483   : > { %v2736_v62 = vsel %vm2735_vm8, %v3636_v29, 0.0 }
 0x484   : > { %2737 = vadd.xlane.f32.xlu1 %v2736_v62 }
 0x485   : > { %4004 = shalt.err (!%p4001_p9)
}
 0x486   : > { %3823 = dma.vmem_to_hbm [thread:$0]  (%p4265_p5), %s2797_s20, 32, %s2799_s7, %s2771_s29   ;;  %v1864_v63 = vpop.xlane.xlu1 %1863  ;;  %v2748_v10 = vlaneseq }
 0x487   : > { %v1865_v0 = vsel %vm1808_vm10, %v1864_v63, 0.0  ;;  %s4708_s18 = sld [smem:[#allocation43_spill]]  ;;  %s4709_s1 = scalar_lea.vmem [#allocation11], %s4302_s28 }
 0x488   : > { %v1866_v1 = vrot.slane %v1865_v0, 4  ;;  %v2749_v15 = vand.u32 127, %v2748_v10  ;;  %s2782_s8 = sshll.u32 %s4709_s1, 4  ;;  %s4710_s3 = smov %s4709_s1  ;;  %s2783_s8 = int_to_ptr.vmem [resolvable:$true] %s2782_s8 }
 0x48a   : > { %v1867_v2 = vadd.f32 %v1866_v1, %v1865_v0  ;;  %vm2752_vm2 = vcmp.eq.s32.totalorder %v2749_v15, 2  ;;  %vm2751_vm3 = vcmp.eq.s32.totalorder %v2749_v15, 1  ;;  %vm2750_vm4 = vcmp.eq.s32.totalorder %v2749_v15, 0 }
 0x48c   : > { %v1868_v3 = vrot.slane %v1867_v2, 2 }
 0x48d   : > { %s2780_s6 = scalar_lea.hbm %s4708_s18, %s4248_s0  ;;  %s2767_s0 = scalar_lea.sflag [#allocation8], %s4302_s28 }
 0x48e   : > { %v1869_v8 = vadd.f32 %v1868_v3, %v1867_v2  ;;  %s2784_s5 = sshll.u32 %s2780_s6, 4  ;;  %s4025_s29 = scalar_lea.hbm %s4708_s18, 8  ;;  %s2785_s5 = int_to_ptr.hbm [resolvable:$true] %s2784_s5 }
 0x48f   : > { %s4019_s4 = sshra.s32 %s2785_s5, 4  ;;  %s4020_s4 = int_to_ptr.hbm [resolvable:$true] %s4019_s4 }
 0x490   : > { %v1870_v12 = vrot.slane %v1869_v8, 1  ;;  %s4021_s26 = scalar_lea.hbm %s4020_s4, 1  ;;  %p4026_p13 = scmp.lt.s32.totalorder %s4020_s4, %s4708_s18 }
 0x491   : > { %p4022_p10 = scmp.ne.s32.totalorder %s4020_s4, %s4021_s26  ;;  %p4027_p0 = scmp.lt.s32.totalorder %s4025_s29, %s4021_s26 }
 0x492   : > { %v1871_v16 = vadd.f32 %v1870_v12, %v1869_v8 }
 0x493   : > { %p4023_p11 = pnand %p4022_p10, %p4265_p5  ;;  %p4028_p1 = por %p4027_p0, %p4026_p13 }
 0x494   : > { %v1872_v19 = vmul.f32 0.5, %v1871_v16 }
 0x495   : > { %p4024_p12 = pneg %p4023_p11 }
 0x497   : > { %p4029_p2 = pnand %p4028_p1, %p4024_p12 }
 0x4f7   : > { %v2738_v4 = vpop.xlane.xlu1 %2737 }
 0x4f8   : > { %v2739_v7 = vsel %vm1808_vm10, %v2738_v4, 0.0 }
 0x4f9   : > { %v2740_v9 = vrot.slane %v2739_v7, 4 }
 0x4fb   : > { %v2741_v11 = vadd.f32 %v2740_v9, %v2739_v7 }
 0x4fd   : > { %v2742_v13 = vrot.slane %v2741_v11, 2 }
 0x4ff   : > { %v2743_v14 = vadd.f32 %v2742_v13, %v2741_v11 }
 0x501   : > { %v2744_v17 = vrot.slane %v2743_v14, 1 }
 0x503   : > { %v2745_v18 = vadd.f32 %v2744_v17, %v2743_v14 }
 0x505   : > { %v2746_v20 = vmul.f32 0.5, %v2745_v18 }
 0x507   : > { %v2747_v21 = vsub.f32 %v1872_v19, %v2746_v20  ;;  %v2753_v22 = vsel %vm2752_vm2, %v2746_v20, 0.0 }
 0x508   : > { %v2754_v23 = vsel %vm2751_vm3, %v1872_v19, %v2753_v22 }
 0x509   : > { %v2755_v24 = vsel %vm2750_vm4, %v2747_v21, %v2754_v23 }
 0x50a   : > { %2756 = vst [vmem:[%s4710_s3] sm:$0x1] %v2755_v24 }
 0x50b   : > { %4032 = shalt.err (!%p4029_p2)
}
 0x50c   : > { %3822 = dma.vmem_to_hbm [thread:$0]  (%p4265_p5), %s2783_s8, 16, %s2785_s5, %s2767_s0  }
 0x50d PF: > { %s4711_s28 = sld [smem:[#allocation21_spill]] }
 0x50e   : > { %s4712_s2 = sld [smem:[#allocation18_spill]] }
 0x513   : > { %p3844_p3 = scmp.ge.s32.totalorder %s4711_s28, 2 }
 0x514   : > { %s2810_s12 = sand.u32 1, %s4712_s2  }
 0x515   : > { %p3834_p4 = pnand %p3844_p3, %p4269_p6  ;;  %s2811_s6 = scalar_lea.sflag [#allocation8], %s2810_s12 }
 0x517   : > { %p3835_p7 = pneg %p3834_p4 }
 0x519   : > { %4058 = dma.done.wait (%p3835_p7), %s2811_s6, 16  }
 0x51a   : > { %4060 = vsyncadd (%p3835_p7), %s2811_s6, 4294967280  ;;  %s2820_s1 = scalar_lea.sflag [#allocation13], %s2810_s12 }
 0x51b   : > { %4062 = dma.done.wait (%p3835_p7), %s2820_s1, 32  }
 0x51c   : > { %4064 = vsyncadd (%p3835_p7), %s2820_s1, 4294967264  ;;  %s4714_s29 = sld [smem:[#allocation22_spill]] }
 0x51d   : > { %s4715_s28 = sld [smem:[#allocation19_spill]] }
 0x51e   : > { %s4716_s8 = sld [smem:[#allocation20_spill]] }
 0x51f   : > { %s4717_s4 = sld [smem:[#allocation23_spill]] }
 0x522   : > { %p43_p5 = scmp.ge.s32.totalorder %s4714_s29, 10  }
 0x524   :  { %45 = sbr.rel (!%p43_p5) target bundleno = 34 (0x22), region = 193 }
 0x529   :  { %2826 = vsyncpa [#allocation7], 1 }
 0x52a   :  { %2828 = vsyncpa [#allocation7 + $0x1], 1 }
 0x52b   :  { %2829 = vsyncpa [#allocation10], 1 }
 0x52c   :  { %2830 = vsyncpa [#allocation8], 1 }
 0x52d   :  { %2832 = vsyncpa [#allocation8 + $0x1], 1 }
 0x52e   :  { %2833 = vsyncpa [#allocation13], 1 }
 0x52f   :  { %2835 = vsyncpa [#allocation13 + $0x1], 1 }

</bundles_post_ra>
